<compile_context>
chip_gen: v7x
topology: tpu7x:2x2x1
jax: 0.10.0
libtpu: 0.0.40
codegen_flags: <defaults>
</compile_context>

<pallas_src>
import functools

import jax
import jax.numpy as jnp
from jax.experimental import pallas as pl
from jax.experimental.pallas import tpu as pltpu


# ----------------------------------------------------------------------------
# Tiling helpers
# ----------------------------------------------------------------------------
def _pick_tile(dim, candidates):
    """Largest candidate dividing dim, else the full dim (always a valid block)."""
    for t in candidates:
        if dim % t == 0:
            return t
    return dim


def _round_up(x, m):
    return (x + m - 1) // m * m


_LANE_TILES = (512, 256, 128)                 # lane-aligned tiles
_ROW_TILES = (512, 256, 128, 64, 32, 16, 8)   # sublane-aligned row tiles


# ----------------------------------------------------------------------------
# Fused matmul kernel:  out = act(LN(a) @ b + bias) + residual
# ----------------------------------------------------------------------------
def _matmul_kernel(a_ref, b_ref, *rest, nk, activation, has_bias, has_residual,
                   has_ln, ln_eps):
    # Ref order: a, b, [ln_g, ln_b], [bias], [residual], out, [acc (nk>1)]
    idx = 0
    ln_g_ref = ln_b_ref = bias_ref = res_ref = None
    if has_ln:
        ln_g_ref, ln_b_ref = rest[idx], rest[idx + 1]
        idx += 2
    if has_bias:
        bias_ref = rest[idx]
        idx += 1
    if has_residual:
        res_ref = rest[idx]
        idx += 1
    o_ref = rest[idx]
    idx += 1
    acc_ref = rest[idx] if nk > 1 else None

    a = a_ref[...]
    if has_ln:
        # Prologue LayerNorm (a tile spans the full K row; wrapper guarantees it).
        xa = a.astype(jnp.float32)
        mu = jnp.mean(xa, axis=-1, keepdims=True)
        var = jnp.mean(jnp.square(xa - mu), axis=-1, keepdims=True)
        a = (xa - mu) * jax.lax.rsqrt(var + ln_eps) * ln_g_ref[...] + ln_b_ref[...]
    # MXU operands in bf16, f32 accumulation (cast on the loaded tile, not in XLA).
    a = a.astype(jnp.bfloat16)
    b = b_ref[...]
    if b.dtype != jnp.bfloat16:
        b = b.astype(jnp.bfloat16)
    prod = jnp.dot(a, b, preferred_element_type=jnp.float32)

    def _epilogue(y):
        if has_bias:
            y = y + bias_ref[...].astype(jnp.float32)
        if activation == "gelu":
            # tanh-GELU; PyTorch nn.GELU default is exact erf-GELU (tiny drift).
            y = jax.nn.gelu(y, approximate=True)
        if has_residual:
            y = y + res_ref[...].astype(jnp.float32)
        return y.astype(o_ref.dtype)

    if nk == 1:
        o_ref[...] = _epilogue(prod)
    else:
        @pl.when(pl.program_id(2) == 0)
        def _():
            acc_ref[...] = prod          # write-on-first (no zero-fill pass)

        @pl.when(pl.program_id(2) > 0)
        def _():
            acc_ref[...] += prod

        @pl.when(pl.program_id(2) == nk - 1)
        def _():
            o_ref[...] = _epilogue(acc_ref[...])


def pallas_matmul(a, b, bias=None, residual=None, activation=None,
                  ln=None, ln_eps=1e-5, out_dtype=jnp.float32):
    """y = act(LN(a) @ b + bias) + residual.

    a: (M, K)        activations (f32 or bf16; cast to bf16 in-kernel)
    b: (K, N)        weights (stored bf16 at init)
    bias: (N,)|None, residual: (M, N)|None, ln: (gamma, beta)|None.
    """
    M, K = a.shape
    K2, N = b.shape
    assert K == K2

    tn = _pick_tile(N, _LANE_TILES)
    if ln is not None and K <= 2048:
        tk = K                               # LN prologue needs the whole row
    else:
        tk = _pick_tile(K, _LANE_TILES)
    if ln is not None and tk != K:
        # Cannot fuse LN (K is split): fall back to a standalone LayerNorm.
        a = pallas_layernorm(a, ln[0], ln[1], eps=ln_eps, out_dtype=jnp.bfloat16)
        ln = None

    # M tile: keep the MXU fed with >=128 rows when M allows; pad otherwise.
    if M >= 128:
        M_pad = _round_up(M, 128)
        tm = 256 if M_pad % 256 == 0 else 128
    else:
        M_pad = _round_up(M, 8)
        tm = M_pad
    if M_pad != M:
        a = jnp.pad(a, ((0, M_pad - M), (0, 0)))
        if residual is not None:
            residual = jnp.pad(residual, ((0, M_pad - M), (0, 0)))

    nk = K // tk
    grid = (M_pad // tm, N // tn, nk)

    in_specs = [
        pl.BlockSpec((tm, tk), lambda i, j, k: (i, k)),
        pl.BlockSpec((tk, tn), lambda i, j, k: (k, j)),
    ]
    args = [a, b]
    if ln is not None:
        in_specs += [pl.BlockSpec((1, tk), lambda i, j, k: (0, 0)),
                     pl.BlockSpec((1, tk), lambda i, j, k: (0, 0))]
        args += [ln[0].reshape(1, K).astype(jnp.float32),
                 ln[1].reshape(1, K).astype(jnp.float32)]
    if bias is not None:
        in_specs.append(pl.BlockSpec((1, tn), lambda i, j, k: (0, j)))
        args.append(bias.reshape(1, N).astype(jnp.float32))
    if residual is not None:
        in_specs.append(pl.BlockSpec((tm, tn), lambda i, j, k: (i, j)))
        args.append(residual)

    scratch = [pltpu.VMEM((tm, tn), jnp.float32)] if nk > 1 else []

    # Generation-aware VMEM budget: derived from the actual tile footprint
    # (double-buffered inputs/outputs + accumulator) with headroom, capped so it
    # is safe on v7x (64 MiB physical / 32 MiB default scoped VMEM).
    out_isize = jnp.dtype(out_dtype).itemsize
    vmem_bytes = 2 * (tm * tk * a.dtype.itemsize + tk * tn * b.dtype.itemsize
                      + tm * tn * out_isize)
    if ln is not None:
        vmem_bytes += 4 * tk * 4
    if bias is not None:
        vmem_bytes += 2 * tn * 4
    if residual is not None:
        vmem_bytes += 2 * tm * tn * 4
    if nk > 1:
        vmem_bytes += tm * tn * 4
    vmem_limit = int(min(max(4 * vmem_bytes, 16 * 1024 * 1024), 32 * 1024 * 1024))

    kernel = functools.partial(
        _matmul_kernel, nk=nk, activation=activation,
        has_bias=bias is not None, has_residual=residual is not None,
        has_ln=ln is not None, ln_eps=ln_eps)

    out = pl.pallas_call(
        kernel,
        out_shape=jax.ShapeDtypeStruct((M_pad, N), out_dtype),
        grid_spec=pltpu.PrefetchScalarGridSpec(
            num_scalar_prefetch=0,
            grid=grid,
            in_specs=in_specs,
            out_specs=pl.BlockSpec((tm, tn), lambda i, j, k: (i, j)),
            scratch_shapes=scratch,
        ),
        compiler_params=pltpu.CompilerParams(
            dimension_semantics=("parallel", "parallel", "arbitrary"),
            vmem_limit_bytes=vmem_limit,
        ),
    )(*args)
    return out[:M] if M_pad != M else out


# ----------------------------------------------------------------------------
# LayerNorm kernels
# ----------------------------------------------------------------------------
def _layernorm_kernel(x_ref, g_ref, b_ref, o_ref, *, eps):
    x = x_ref[...].astype(jnp.float32)
    mu = jnp.mean(x, axis=-1, keepdims=True)
    var = jnp.mean(jnp.square(x - mu), axis=-1, keepdims=True)
    xhat = (x - mu) * jax.lax.rsqrt(var + eps)
    o_ref[...] = (xhat * g_ref[...] + b_ref[...]).astype(o_ref.dtype)


def pallas_layernorm(x, gamma, beta, eps=1e-5, out_dtype=jnp.float32):
    """Row-wise LayerNorm over the last dim.  x: (R, D)."""
    R, D = x.shape
    tr = _pick_tile(R, _ROW_TILES)
    return pl.pallas_call(
        functools.partial(_layernorm_kernel, eps=eps),
        out_shape=jax.ShapeDtypeStruct((R, D), out_dtype),
        grid=(R // tr,),
        in_specs=[
            pl.BlockSpec((tr, D), lambda i: (i, 0)),
            pl.BlockSpec((1, D), lambda i: (0, 0)),
            pl.BlockSpec((1, D), lambda i: (0, 0)),
        ],
        out_specs=pl.BlockSpec((tr, D), lambda i: (i, 0)),
        compiler_params=pltpu.CompilerParams(dimension_semantics=("parallel",)),
    )(x, gamma.reshape(1, D).astype(jnp.float32),
      beta.reshape(1, D).astype(jnp.float32))


def _layernorm_posemb_kernel(x_ref, g_ref, b_ref, pe_ref, o_ref, *, eps):
    x = x_ref[0].astype(jnp.float32)                      # (tr, D)
    mu = jnp.mean(x, axis=-1, keepdims=True)
    var = jnp.mean(jnp.square(x - mu), axis=-1, keepdims=True)
    xhat = (x - mu) * jax.lax.rsqrt(var + eps)
    o_ref[0] = (xhat * g_ref[...] + b_ref[...] + pe_ref[...]).astype(o_ref.dtype)


def pallas_layernorm_posemb(x, gamma, beta, posemb, eps=1e-5,
                            out_dtype=jnp.float32):
    """LayerNorm over last dim with the (N, D) positional embedding add fused.

    x: (B, N, D) -> (B, N, D).
    """
    B, N, D = x.shape
    tr = _pick_tile(N, _ROW_TILES)
    return pl.pallas_call(
        functools.partial(_layernorm_posemb_kernel, eps=eps),
        out_shape=jax.ShapeDtypeStruct((B, N, D), out_dtype),
        grid=(B, N // tr),
        in_specs=[
            pl.BlockSpec((1, tr, D), lambda b, i: (b, i, 0)),
            pl.BlockSpec((1, D), lambda b, i: (0, 0)),
            pl.BlockSpec((1, D), lambda b, i: (0, 0)),
            pl.BlockSpec((tr, D), lambda b, i: (i, 0)),
        ],
        out_specs=pl.BlockSpec((1, tr, D), lambda b, i: (b, i, 0)),
        compiler_params=pltpu.CompilerParams(
            dimension_semantics=("parallel", "parallel")),
    )(x, gamma.reshape(1, D).astype(jnp.float32),
      beta.reshape(1, D).astype(jnp.float32),
      posemb.astype(jnp.float32))


# ----------------------------------------------------------------------------
# Attention kernel (per batch element; static per-head slices from the QKV buffer)
# ----------------------------------------------------------------------------
def _attention_kernel(qkv_ref, o_ref, *, heads, dim_head, inner):
    # qkv_ref: (1, N, 3*inner) bf16 ; o_ref: (1, N, inner) bf16.
    # Softmax scale already folded into the Q projection weights.
    for h in range(heads):                 # static loop: static column slices
        q = qkv_ref[0, :, h * dim_head:(h + 1) * dim_head]               # (N, dh)
        k = qkv_ref[0, :, inner + h * dim_head:inner + (h + 1) * dim_head]
        v = qkv_ref[0, :, 2 * inner + h * dim_head:2 * inner + (h + 1) * dim_head]
        s = jax.lax.dot_general(q, k, (((1,), (1,)), ((), ())),
                                preferred_element_type=jnp.float32)      # (N, N)
        s = s - jnp.max(s, axis=-1, keepdims=True)
        p = jnp.exp(s)
        p = p * pl.reciprocal(jnp.sum(p, axis=-1, keepdims=True), approx=True)
        o = jnp.dot(p.astype(jnp.bfloat16), v,
                    preferred_element_type=jnp.float32)                  # (N, dh)
        o_ref[0, :, h * dim_head:(h + 1) * dim_head] = o.astype(o_ref.dtype)


def pallas_attention(qkv, heads, dim_head):
    """Full (non-causal) softmax attention.

    qkv: (B, N, 3*heads*dim_head) bf16 (columns ordered [Q | K | V], head-major)
    returns (B, N, heads*dim_head) bf16 — reshapes for free into (B*N, inner).
    """
    B, N, three_inner = qkv.shape
    inner = heads * dim_head
    assert three_inner == 3 * inner
    # TODO(synk): for long N / many heads use a flash-style KV-tiled kernel with
    #             a heads grid axis; here N is the (small) frame count.
    return pl.pallas_call(
        functools.partial(_attention_kernel, heads=heads, dim_head=dim_head,
                          inner=inner),
        out_shape=jax.ShapeDtypeStruct((B, N, inner), jnp.bfloat16),
        grid=(B,),
        in_specs=[pl.BlockSpec((1, N, 3 * inner), lambda b: (b, 0, 0))],
        out_specs=pl.BlockSpec((1, N, inner), lambda b: (b, 0, 0)),
        compiler_params=pltpu.CompilerParams(dimension_semantics=("parallel",)),
    )(qkv)


# ----------------------------------------------------------------------------
# Model: params + forward
# ----------------------------------------------------------------------------
def posemb_sincos_1d(n, dim, temperature=10000.0):
    assert dim % 2 == 0
    pos = jnp.arange(n, dtype=jnp.float32)[:, None]
    omega = jnp.arange(dim // 2, dtype=jnp.float32) / (dim // 2 - 1)
    omega = 1.0 / (temperature ** omega)
    ang = pos * omega[None, :]
    return jnp.concatenate([jnp.sin(ang), jnp.cos(ang)], axis=1)  # (n, dim)


def init_params(key, *, in_features, embed_dim, depth, heads, dim_head,
                mlp_dim, num_classes):
    keys = iter(jax.random.split(key, 8 + depth * 4))
    s = 0.02
    inner = heads * dim_head
    p = {
        # synthetic backbone encoder: linear projection of the flattened frame
        # (weights stored bf16 once — no per-call wrapper casts)
        "enc_w": (s * jax.random.normal(next(keys), (in_features, embed_dim),
                                        jnp.float32)).astype(jnp.bfloat16),
        "enc_b": jnp.zeros((embed_dim,), jnp.float32),
        # outer self._ln
        "ln_g": jnp.ones((embed_dim,), jnp.float32),
        "ln_b": jnp.zeros((embed_dim,), jnp.float32),
        # final transformer norm + classification head
        "final_ln_g": jnp.ones((embed_dim,), jnp.float32),
        "final_ln_b": jnp.zeros((embed_dim,), jnp.float32),
        "head_w": s * jax.random.normal(next(keys), (embed_dim, num_classes),
                                        jnp.float32),
        "head_b": jnp.zeros((num_classes,), jnp.float32),
        "layers": [],
    }
    # Fold the attention softmax scale into the Q projection columns (done at
    # checkpoint-conversion time for real weights): zero runtime cost.
    qkv_col_scale = jnp.concatenate([
        jnp.full((inner,), dim_head ** -0.5, jnp.float32),
        jnp.ones((2 * inner,), jnp.float32)])
    for _ in range(depth):
        w_qkv = s * jax.random.normal(next(keys), (embed_dim, 3 * inner), jnp.float32)
        p["layers"].append({
            "attn_ln_g": jnp.ones((embed_dim,), jnp.float32),
            "attn_ln_b": jnp.zeros((embed_dim,), jnp.float32),
            "w_qkv": (w_qkv * qkv_col_scale[None, :]).astype(jnp.bfloat16),
            "w_out": (s * jax.random.normal(next(keys), (inner, embed_dim),
                                            jnp.float32)).astype(jnp.bfloat16),
            "ff_ln_g": jnp.ones((embed_dim,), jnp.float32),
            "ff_ln_b": jnp.zeros((embed_dim,), jnp.float32),
            "w_ff1": (s * jax.random.normal(next(keys), (embed_dim, mlp_dim),
                                            jnp.float32)).astype(jnp.bfloat16),
            "b_ff1": jnp.zeros((mlp_dim,), jnp.float32),
            "w_ff2": (s * jax.random.normal(next(keys), (mlp_dim, embed_dim),
                                            jnp.float32)).astype(jnp.bfloat16),
            "b_ff2": jnp.zeros((embed_dim,), jnp.float32),
        })
    return p


def action_recognition_forward(params, X, *, T, stride, heads, dim_head):
    """X: (B, N, C, H, W) -> (logits (B, num_classes), Z (B, n_clips, T, D))."""
    B, N, C, H, W = X.shape
    D = params["enc_w"].shape[1]
    inner = heads * dim_head

    # --- backbone encoder (f32 input cast to bf16 inside the kernel) ---
    Xf = X.reshape(B * N, C * H * W)
    Z_flat = pallas_matmul(Xf, params["enc_w"], bias=params["enc_b"],
                           out_dtype=jnp.float32)                    # (B*N, D)
    Z = Z_flat.reshape(B, N, D)

    # --- outer LayerNorm (self._ln) with the sincos pos-emb add fused ---
    x = pallas_layernorm_posemb(Z, params["ln_g"], params["ln_b"],
                                posemb_sincos_1d(N, D))              # (B, N, D) f32

    # --- SimpleViT-1D temporal encoder (residual stream kept in f32) ---
    x_flat = x.reshape(B * N, D)
    for layer in params["layers"]:
        # pre-norm attention: LN fused into the QKV matmul prologue
        qkv = pallas_matmul(x_flat, layer["w_qkv"],
                            ln=(layer["attn_ln_g"], layer["attn_ln_b"]),
                            out_dtype=jnp.bfloat16)                  # (B*N, 3*inner)
        attn = pallas_attention(qkv.reshape(B, N, 3 * inner), heads, dim_head)
        # residual add fused into the output-projection epilogue
        x_flat = pallas_matmul(attn.reshape(B * N, inner), layer["w_out"],
                               residual=x_flat, out_dtype=jnp.float32)

        # pre-norm MLP: LN + bias + GELU fused into FF1, bias + residual into FF2
        h = pallas_matmul(x_flat, layer["w_ff1"], bias=layer["b_ff1"],
                          activation="gelu",
                          ln=(layer["ff_ln_g"], layer["ff_ln_b"]),
                          out_dtype=jnp.bfloat16)
        x_flat = pallas_matmul(h, layer["w_ff2"], bias=layer["b_ff2"],
                               residual=x_flat, out_dtype=jnp.float32)

    xn = pallas_layernorm(x_flat, params["final_ln_g"], params["final_ln_b"],
                          out_dtype=jnp.float32)
    pooled = xn.reshape(B, N, D).mean(axis=1)                        # (B, D)
    # classifier head: (B, num_classes) is below one vreg -> leave to XLA
    logits = pooled @ params["head_w"] + params["head_b"]

    # --- Z.unfold(dim=1, size=T, step=stride).permute(0,1,3,2) ---
    # single strided gather (window extraction), no hot-path arithmetic
    n_clips = (N - T) // stride + 1
    idx = jnp.arange(n_clips)[:, None] * stride + jnp.arange(T)[None, :]
    Z_unfold = Z[:, idx]                                             # (B, n_clips, T, D)

    return logits, Z_unfold


# ----------------------------------------------------------------------------
if __name__ == "__main__":
    # Small, module-consistent shapes.
    B, N, C, H, W = 2, 8, 4, 16, 16
    embed_dim, depth, heads, dim_head, mlp_dim, num_classes = 32, 2, 4, 16, 64, 10
    T, stride = 4, 2

    key = jax.random.PRNGKey(0)
    kx, kp = jax.random.split(key)
    X = jax.random.normal(kx, (B, N, C, H, W), jnp.float32)
    params = init_params(
        kp, in_features=C * H * W, embed_dim=embed_dim, depth=depth,
        heads=heads, dim_head=dim_head, mlp_dim=mlp_dim, num_classes=num_classes)

    fwd = jax.jit(functools.partial(
        action_recognition_forward, T=T, stride=stride,
        heads=heads, dim_head=dim_head))
    logits, Z = fwd(params, X)
    jax.block_until_ready((logits, Z))

    n_clips = (N - T) // stride + 1
    assert logits.shape == (B, num_classes), logits.shape
    assert Z.shape == (B, n_clips, T, embed_dim), Z.shape
    assert bool(jnp.all(jnp.isfinite(logits))) and bool(jnp.all(jnp.isfinite(Z)))
    print("KERNEL_OK")
</pallas_src>

<mosaic_0001>
module attributes {stable_mosaic.version = 11 : i64} {
  func.func @_matmul_kernel(%arg0: i32, %arg1: i32, %arg2: i32, %arg3: memref<16x512xf32, #tpu.memory_space<vmem>>, %arg4: memref<512x32xbf16, #tpu.memory_space<vmem>>, %arg5: memref<1x32xf32, #tpu.memory_space<vmem>>, %arg6: memref<16x32xf32, #tpu.memory_space<vmem>>, %arg7: memref<16x32xf32, #tpu.memory_space<vmem>>) attributes {dimension_semantics = [#tpu.dimension_semantics<parallel>, #tpu.dimension_semantics<parallel>, #tpu.dimension_semantics<arbitrary>], iteration_bounds = array<i64: 1, 1, 2>, scalar_prefetch = 0 : i64, scratch_operands = 1 : i64, tpu.core_type = #tpu.core_type<tc>, window_params = [{transform_indices = @transform_0, window_bounds = array<i64: 16, 512>}, {transform_indices = @transform_1, window_bounds = array<i64: 512, 32>}, {transform_indices = @transform_2, window_bounds = array<i64: 1, 32>}, {transform_indices = @transform_3, window_bounds = array<i64: 16, 32>}]} {
    %c0 = arith.constant 0 : index
    %c0_0 = arith.constant 0 : index
    %0 = vector.load %arg3[%c0, %c0_0] : memref<16x512xf32, #tpu.memory_space<vmem>>, vector<16x512xf32>
    %1 = arith.truncf %0 : vector<16x512xf32> to vector<16x512xbf16>
    %c0_1 = arith.constant 0 : index
    %c0_2 = arith.constant 0 : index
    %2 = vector.load %arg4[%c0_1, %c0_2] : memref<512x32xbf16, #tpu.memory_space<vmem>>, vector<512x32xbf16>
    %cst = arith.constant dense<0.000000e+00> : vector<16x32xf32>
    %3 = tpu.matmul %1, %2, %cst {dimension_numbers = #tpu.dot_dimension_numbers<[1], [0], [0], [1], [0, 0, 1, 1], [], []>} : vector<16x512xbf16>, vector<512x32xbf16>, vector<16x32xf32> -> vector<16x32xf32>
    %c0_i32 = arith.constant 0 : i32
    %4 = arith.cmpi eq, %arg2, %c0_i32 : i32
    %5 = arith.extui %4 : i1 to i32
    %c0_i32_3 = arith.constant 0 : i32
    %6 = arith.cmpi ne, %5, %c0_i32_3 : i32
    scf.if %6 {
      %c0_7 = arith.constant 0 : index
      %c0_8 = arith.constant 0 : index
      %13 = vector.load %arg7[%c0_7, %c0_8] : memref<16x32xf32, #tpu.memory_space<vmem>>, vector<16x32xf32>
      tpu.vector_store %arg7[%c0_7, %c0_8], %3 {strides = array<i32>} : memref<16x32xf32, #tpu.memory_space<vmem>>, vector<16x32xf32>,
    } else {
    }
    %c0_i32_4 = arith.constant 0 : i32
    %7 = arith.cmpi sgt, %arg2, %c0_i32_4 : i32
    %8 = arith.extui %7 : i1 to i32
    %c0_i32_5 = arith.constant 0 : i32
    %9 = arith.cmpi ne, %8, %c0_i32_5 : i32
    scf.if %9 {
      %c0_7 = arith.constant 0 : index
      %c0_8 = arith.constant 0 : index
      %13 = vector.load %arg7[%c0_7, %c0_8] : memref<16x32xf32, #tpu.memory_space<vmem>>, vector<16x32xf32>
      %14 = arith.addf %13, %3 : vector<16x32xf32>
      %c0_9 = arith.constant 0 : index
      %c0_10 = arith.constant 0 : index
      %15 = vector.load %arg7[%c0_9, %c0_10] : memref<16x32xf32, #tpu.memory_space<vmem>>, vector<16x32xf32>
      tpu.vector_store %arg7[%c0_9, %c0_10], %14 {strides = array<i32>} : memref<16x32xf32, #tpu.memory_space<vmem>>, vector<16x32xf32>,
    } else {
    }
    %c1_i32 = arith.constant 1 : i32
    %10 = arith.cmpi eq, %arg2, %c1_i32 : i32
    %11 = arith.extui %10 : i1 to i32
    %c0_i32_6 = arith.constant 0 : i32
    %12 = arith.cmpi ne, %11, %c0_i32_6 : i32
    scf.if %12 {
      %c0_7 = arith.constant 0 : index
      %c0_8 = arith.constant 0 : index
      %13 = vector.load %arg7[%c0_7, %c0_8] : memref<16x32xf32, #tpu.memory_space<vmem>>, vector<16x32xf32>
      %c0_9 = arith.constant 0 : index
      %c0_10 = arith.constant 0 : index
      %14 = vector.load %arg5[%c0_9, %c0_10] : memref<1x32xf32, #tpu.memory_space<vmem>>, vector<1x32xf32>
      %15 = vector.broadcast %14 : vector<1x32xf32> to vector<16x32xf32>
      %16 = arith.addf %13, %15 : vector<16x32xf32>
      %c0_11 = arith.constant 0 : index
      %c0_12 = arith.constant 0 : index
      %17 = vector.load %arg6[%c0_11, %c0_12] : memref<16x32xf32, #tpu.memory_space<vmem>>, vector<16x32xf32>
      tpu.vector_store %arg6[%c0_11, %c0_12], %16 {strides = array<i32>} : memref<16x32xf32, #tpu.memory_space<vmem>>, vector<16x32xf32>,
    } else {
    }
    return
  }
  func.func @transform_0(%arg0: i32, %arg1: i32, %arg2: i32) -> (i32, i32) {
    %c0_i32 = arith.constant 0 : i32
    return %arg0, %arg2 : i32, i32
  }
  func.func @transform_1(%arg0: i32, %arg1: i32, %arg2: i32) -> (i32, i32) {
    %c0_i32 = arith.constant 0 : i32
    return %arg2, %arg1 : i32, i32
  }
  func.func @transform_2(%arg0: i32, %arg1: i32, %arg2: i32) -> (i32, i32) {
    %c0_i32 = arith.constant 0 : i32
    %c0_i32_0 = arith.constant 0 : i32
    return %c0_i32, %arg1 : i32, i32
  }
  func.func @transform_3(%arg0: i32, %arg1: i32, %arg2: i32) -> (i32, i32) {
    %c0_i32 = arith.constant 0 : i32
    return %arg0, %arg1 : i32, i32
  }
}

module attributes {stable_mosaic.version = 11 : i64} {
  func.func @_layernorm_posemb_kernel(%arg0: i32, %arg1: i32, %arg2: memref<1x8x32xf32, #tpu.memory_space<vmem>>, %arg3: memref<1x32xf32, #tpu.memory_space<vmem>>, %arg4: memref<1x32xf32, #tpu.memory_space<vmem>>, %arg5: memref<8x32xf32, #tpu.memory_space<vmem>>, %arg6: memref<1x8x32xf32, #tpu.memory_space<vmem>>) attributes {dimension_semantics = [#tpu.dimension_semantics<parallel>, #tpu.dimension_semantics<parallel>], iteration_bounds = array<i64: 2, 1>, scalar_prefetch = 0 : i64, scratch_operands = 0 : i64, tpu.core_type = #tpu.core_type<tc>, window_params = [{transform_indices = @transform_0, window_bounds = array<i64: 1, 8, 32>}, {pipeline_mode = #tpu.pipeline_mode<synchronous>, transform_indices = @transform_1, window_bounds = array<i64: 1, 32>}, {pipeline_mode = #tpu.pipeline_mode<synchronous>, transform_indices = @transform_2, window_bounds = array<i64: 1, 32>}, {transform_indices = @transform_3, window_bounds = array<i64: 8, 32>}, {transform_indices = @transform_4, window_bounds = array<i64: 1, 8, 32>}]} {
    %c0 = arith.constant 0 : index
    %c0_0 = arith.constant 0 : index
    %c0_1 = arith.constant 0 : index
    %0 = vector.load %arg2[%c0, %c0_0, %c0_1] : memref<1x8x32xf32, #tpu.memory_space<vmem>>, vector<1x8x32xf32>
    %1 = vector.shape_cast %0 : vector<1x8x32xf32> to vector<8x32xf32>
    %cst = arith.constant dense<0.000000e+00> : vector<8xf32>
    %2 = vector.multi_reduction <add>, %1, %cst [1] : vector<8x32xf32> to vector<8xf32>
    %3 = vector.shape_cast %2 : vector<8xf32> to vector<8x1xf32>
    %cst_2 = arith.constant 3.200000e+01 : f32
    %4 = vector.broadcast %cst_2 : f32 to vector<8x1xf32>
    %5 = arith.divf %3, %4 : vector<8x1xf32>
    %6 = vector.broadcast %5 : vector<8x1xf32> to vector<8x32xf32>
    %7 = arith.subf %1, %6 : vector<8x32xf32>
    %8 = arith.mulf %7, %7 : vector<8x32xf32>
    %cst_3 = arith.constant dense<0.000000e+00> : vector<8xf32>
    %9 = vector.multi_reduction <add>, %8, %cst_3 [1] : vector<8x32xf32> to vector<8xf32>
    %10 = vector.shape_cast %9 : vector<8xf32> to vector<8x1xf32>
    %cst_4 = arith.constant 3.200000e+01 : f32
    %11 = vector.broadcast %cst_4 : f32 to vector<8x1xf32>
    %12 = arith.divf %10, %11 : vector<8x1xf32>
    %13 = vector.broadcast %5 : vector<8x1xf32> to vector<8x32xf32>
    %14 = arith.subf %1, %13 : vector<8x32xf32>
    %cst_5 = arith.constant 9.99999974E-6 : f32
    %15 = vector.broadcast %cst_5 : f32 to vector<8x1xf32>
    %16 = arith.addf %12, %15 : vector<8x1xf32>
    %17 = math.rsqrt %16 : vector<8x1xf32>
    %18 = vector.broadcast %17 : vector<8x1xf32> to vector<8x32xf32>
    %19 = arith.mulf %14, %18 : vector<8x32xf32>
    %c0_6 = arith.constant 0 : index
    %c0_7 = arith.constant 0 : index
    %20 = vector.load %arg3[%c0_6, %c0_7] : memref<1x32xf32, #tpu.memory_space<vmem>>, vector<1x32xf32>
    %21 = vector.broadcast %20 : vector<1x32xf32> to vector<8x32xf32>
    %22 = arith.mulf %19, %21 : vector<8x32xf32>
    %c0_8 = arith.constant 0 : index
    %c0_9 = arith.constant 0 : index
    %23 = vector.load %arg4[%c0_8, %c0_9] : memref<1x32xf32, #tpu.memory_space<vmem>>, vector<1x32xf32>
    %24 = vector.broadcast %23 : vector<1x32xf32> to vector<8x32xf32>
    %25 = arith.addf %22, %24 : vector<8x32xf32>
    %c0_10 = arith.constant 0 : index
    %c0_11 = arith.constant 0 : index
    %26 = vector.load %arg5[%c0_10, %c0_11] : memref<8x32xf32, #tpu.memory_space<vmem>>, vector<8x32xf32>
    %27 = arith.addf %25, %26 : vector<8x32xf32>
    %c0_12 = arith.constant 0 : index
    %c0_13 = arith.constant 0 : index
    %c0_14 = arith.constant 0 : index
    %28 = vector.load %arg6[%c0_12, %c0_13, %c0_14] : memref<1x8x32xf32, #tpu.memory_space<vmem>>, vector<1x8x32xf32>
    %29 = vector.shape_cast %28 : vector<1x8x32xf32> to vector<8x32xf32>
    %30 = vector.shape_cast %27 : vector<8x32xf32> to vector<1x8x32xf32>
    tpu.vector_store %arg6[%c0_12, %c0_13, %c0_14], %30 {strides = array<i32>} : memref<1x8x32xf32, #tpu.memory_space<vmem>>, vector<1x8x32xf32>,
    return
  }
  func.func @transform_0(%arg0: i32, %arg1: i32) -> (i32, i32, i32) {
    %c0_i32 = arith.constant 0 : i32
    %c0_i32_0 = arith.constant 0 : i32
    return %arg0, %arg1, %c0_i32 : i32, i32, i32
  }
  func.func @transform_1(%arg0: i32, %arg1: i32) -> (i32, i32) {
    %c0_i32 = arith.constant 0 : i32
    %c0_i32_0 = arith.constant 0 : i32
    %c0_i32_1 = arith.constant 0 : i32
    return %c0_i32, %c0_i32_0 : i32, i32
  }
  func.func @transform_2(%arg0: i32, %arg1: i32) -> (i32, i32) {
    %c0_i32 = arith.constant 0 : i32
    %c0_i32_0 = arith.constant 0 : i32
    %c0_i32_1 = arith.constant 0 : i32
    return %c0_i32, %c0_i32_0 : i32, i32
  }
  func.func @transform_3(%arg0: i32, %arg1: i32) -> (i32, i32) {
    %c0_i32 = arith.constant 0 : i32
    %c0_i32_0 = arith.constant 0 : i32
    return %arg1, %c0_i32 : i32, i32
  }
  func.func @transform_4(%arg0: i32, %arg1: i32) -> (i32, i32, i32) {
    %c0_i32 = arith.constant 0 : i32
    %c0_i32_0 = arith.constant 0 : i32
    return %arg0, %arg1, %c0_i32 : i32, i32, i32
  }
}

module attributes {stable_mosaic.version = 11 : i64} {
  func.func @_matmul_kernel(%arg0: i32, %arg1: i32, %arg2: i32, %arg3: memref<16x32xf32, #tpu.memory_space<vmem>>, %arg4: memref<32x192xbf16, #tpu.memory_space<vmem>>, %arg5: memref<1x32xf32, #tpu.memory_space<vmem>>, %arg6: memref<1x32xf32, #tpu.memory_space<vmem>>, %arg7: memref<16x192xbf16, #tpu.memory_space<vmem>>) attributes {dimension_semantics = [#tpu.dimension_semantics<parallel>, #tpu.dimension_semantics<parallel>, #tpu.dimension_semantics<arbitrary>], iteration_bounds = array<i64: 1, 1, 1>, scalar_prefetch = 0 : i64, scratch_operands = 0 : i64, tpu.core_type = #tpu.core_type<tc>, window_params = [{transform_indices = @transform_0, window_bounds = array<i64: 16, 32>}, {transform_indices = @transform_1, window_bounds = array<i64: 32, 192>}, {pipeline_mode = #tpu.pipeline_mode<synchronous>, transform_indices = @transform_2, window_bounds = array<i64: 1, 32>}, {pipeline_mode = #tpu.pipeline_mode<synchronous>, transform_indices = @transform_3, window_bounds = array<i64: 1, 32>}, {transform_indices = @transform_4, window_bounds = array<i64: 16, 192>}]} {
    %c0 = arith.constant 0 : index
    %c0_0 = arith.constant 0 : index
    %0 = vector.load %arg3[%c0, %c0_0] : memref<16x32xf32, #tpu.memory_space<vmem>>, vector<16x32xf32>
    %cst = arith.constant dense<0.000000e+00> : vector<16xf32>
    %1 = vector.multi_reduction <add>, %0, %cst [1] : vector<16x32xf32> to vector<16xf32>
    %2 = vector.shape_cast %1 : vector<16xf32> to vector<16x1xf32>
    %cst_1 = arith.constant 3.200000e+01 : f32
    %3 = vector.broadcast %cst_1 : f32 to vector<16x1xf32>
    %4 = arith.divf %2, %3 : vector<16x1xf32>
    %5 = vector.broadcast %4 : vector<16x1xf32> to vector<16x32xf32>
    %6 = arith.subf %0, %5 : vector<16x32xf32>
    %7 = arith.mulf %6, %6 : vector<16x32xf32>
    %cst_2 = arith.constant dense<0.000000e+00> : vector<16xf32>
    %8 = vector.multi_reduction <add>, %7, %cst_2 [1] : vector<16x32xf32> to vector<16xf32>
    %9 = vector.shape_cast %8 : vector<16xf32> to vector<16x1xf32>
    %cst_3 = arith.constant 3.200000e+01 : f32
    %10 = vector.broadcast %cst_3 : f32 to vector<16x1xf32>
    %11 = arith.divf %9, %10 : vector<16x1xf32>
    %12 = vector.broadcast %4 : vector<16x1xf32> to vector<16x32xf32>
    %13 = arith.subf %0, %12 : vector<16x32xf32>
    %cst_4 = arith.constant 9.99999974E-6 : f32
    %14 = vector.broadcast %cst_4 : f32 to vector<16x1xf32>
    %15 = arith.addf %11, %14 : vector<16x1xf32>
    %16 = math.rsqrt %15 : vector<16x1xf32>
    %17 = vector.broadcast %16 : vector<16x1xf32> to vector<16x32xf32>
    %18 = arith.mulf %13, %17 : vector<16x32xf32>
    %c0_5 = arith.constant 0 : index
    %c0_6 = arith.constant 0 : index
    %19 = vector.load %arg5[%c0_5, %c0_6] : memref<1x32xf32, #tpu.memory_space<vmem>>, vector<1x32xf32>
    %20 = vector.broadcast %19 : vector<1x32xf32> to vector<16x32xf32>
    %21 = arith.mulf %18, %20 : vector<16x32xf32>
    %c0_7 = arith.constant 0 : index
    %c0_8 = arith.constant 0 : index
    %22 = vector.load %arg6[%c0_7, %c0_8] : memref<1x32xf32, #tpu.memory_space<vmem>>, vector<1x32xf32>
    %23 = vector.broadcast %22 : vector<1x32xf32> to vector<16x32xf32>
    %24 = arith.addf %21, %23 : vector<16x32xf32>
    %25 = arith.truncf %24 : vector<16x32xf32> to vector<16x32xbf16>
    %c0_9 = arith.constant 0 : index
    %c0_10 = arith.constant 0 : index
    %26 = vector.load %arg4[%c0_9, %c0_10] : memref<32x192xbf16, #tpu.memory_space<vmem>>, vector<32x192xbf16>
    %cst_11 = arith.constant dense<0.000000e+00> : vector<16x192xf32>
    %27 = tpu.matmul %25, %26, %cst_11 {dimension_numbers = #tpu.dot_dimension_numbers<[1], [0], [0], [1], [0, 0, 1, 1], [], []>} : vector<16x32xbf16>, vector<32x192xbf16>, vector<16x192xf32> -> vector<16x192xf32>
    %28 = arith.truncf %27 : vector<16x192xf32> to vector<16x192xbf16>
    %c0_12 = arith.constant 0 : index
    %c0_13 = arith.constant 0 : index
    %29 = vector.load %arg7[%c0_12, %c0_13] : memref<16x192xbf16, #tpu.memory_space<vmem>>, vector<16x192xbf16>
    tpu.vector_store %arg7[%c0_12, %c0_13], %28 {strides = array<i32>} : memref<16x192xbf16, #tpu.memory_space<vmem>>, vector<16x192xbf16>,
    return
  }
  func.func @transform_0(%arg0: i32, %arg1: i32, %arg2: i32) -> (i32, i32) {
    %c0_i32 = arith.constant 0 : i32
    return %arg0, %arg2 : i32, i32
  }
  func.func @transform_1(%arg0: i32, %arg1: i32, %arg2: i32) -> (i32, i32) {
    %c0_i32 = arith.constant 0 : i32
    return %arg2, %arg1 : i32, i32
  }
  func.func @transform_2(%arg0: i32, %arg1: i32, %arg2: i32) -> (i32, i32) {
    %c0_i32 = arith.constant 0 : i32
    %c0_i32_0 = arith.constant 0 : i32
    %c0_i32_1 = arith.constant 0 : i32
    return %c0_i32, %c0_i32_0 : i32, i32
  }
  func.func @transform_3(%arg0: i32, %arg1: i32, %arg2: i32) -> (i32, i32) {
    %c0_i32 = arith.constant 0 : i32
    %c0_i32_0 = arith.constant 0 : i32
    %c0_i32_1 = arith.constant 0 : i32
    return %c0_i32, %c0_i32_0 : i32, i32
  }
  func.func @transform_4(%arg0: i32, %arg1: i32, %arg2: i32) -> (i32, i32) {
    %c0_i32 = arith.constant 0 : i32
    return %arg0, %arg1 : i32, i32
  }
}

module attributes {stable_mosaic.version = 11 : i64} {
  func.func @_attention_kernel(%arg0: i32, %arg1: memref<1x8x192xbf16, #tpu.memory_space<vmem>>, %arg2: memref<1x8x64xbf16, #tpu.memory_space<vmem>>) attributes {dimension_semantics = [#tpu.dimension_semantics<parallel>], iteration_bounds = array<i64: 2>, scalar_prefetch = 0 : i64, scratch_operands = 0 : i64, tpu.core_type = #tpu.core_type<tc>, window_params = [{transform_indices = @transform_0, window_bounds = array<i64: 1, 8, 192>}, {transform_indices = @transform_1, window_bounds = array<i64: 1, 8, 64>}]} {
    %c0 = arith.constant 0 : index
    %c0_0 = arith.constant 0 : index
    %c0_1 = arith.constant 0 : index
    %0 = vector.load %arg1[%c0, %c0_0, %c0_1] : memref<1x8x192xbf16, #tpu.memory_space<vmem>>, vector<1x8x16xbf16>
    %1 = vector.shape_cast %0 : vector<1x8x16xbf16> to vector<8x16xbf16>
    %c0_2 = arith.constant 0 : index
    %c0_3 = arith.constant 0 : index
    %c64 = arith.constant 64 : index
    %2 = vector.load %arg1[%c0_2, %c0_3, %c64] : memref<1x8x192xbf16, #tpu.memory_space<vmem>>, vector<1x8x16xbf16>
    %3 = vector.shape_cast %2 : vector<1x8x16xbf16> to vector<8x16xbf16>
    %c0_4 = arith.constant 0 : index
    %c0_5 = arith.constant 0 : index
    %c128 = arith.constant 128 : index
    %4 = vector.load %arg1[%c0_4, %c0_5, %c128] : memref<1x8x192xbf16, #tpu.memory_space<vmem>>, vector<1x8x16xbf16>
    %5 = vector.shape_cast %4 : vector<1x8x16xbf16> to vector<8x16xbf16>
    %cst = arith.constant dense<0.000000e+00> : vector<8x8xf32>
    %6 = tpu.matmul %1, %3, %cst {dimension_numbers = #tpu.dot_dimension_numbers<[1], [1], [0], [0], [0, 0, 1, 0], [], []>} : vector<8x16xbf16>, vector<8x16xbf16>, vector<8x8xf32> -> vector<8x8xf32>
    %cst_6 = arith.constant dense<0xFF800000> : vector<8xf32>
    %7 = vector.multi_reduction <maximumf>, %6, %cst_6 [1] : vector<8x8xf32> to vector<8xf32>
    %8 = vector.shape_cast %7 : vector<8xf32> to vector<8x1xf32>
    %9 = vector.broadcast %8 : vector<8x1xf32> to vector<8x8xf32>
    %10 = arith.subf %6, %9 : vector<8x8xf32>
    %11 = math.exp %10 : vector<8x8xf32>
    %cst_7 = arith.constant dense<0.000000e+00> : vector<8xf32>
    %12 = vector.multi_reduction <add>, %11, %cst_7 [1] : vector<8x8xf32> to vector<8xf32>
    %13 = vector.shape_cast %12 : vector<8xf32> to vector<8x1xf32>
    %14 = tpu.reciprocal %13 {approx = true} : vector<8x1xf32> -> vector<8x1xf32>
    %15 = vector.broadcast %14 : vector<8x1xf32> to vector<8x8xf32>
    %16 = arith.mulf %11, %15 : vector<8x8xf32>
    %17 = arith.truncf %16 : vector<8x8xf32> to vector<8x8xbf16>
    %cst_8 = arith.constant dense<0.000000e+00> : vector<8x16xf32>
    %18 = tpu.matmul %17, %5, %cst_8 {dimension_numbers = #tpu.dot_dimension_numbers<[1], [0], [0], [1], [0, 0, 1, 1], [], []>} : vector<8x8xbf16>, vector<8x16xbf16>, vector<8x16xf32> -> vector<8x16xf32>
    %19 = arith.truncf %18 : vector<8x16xf32> to vector<8x16xbf16>
    %c0_9 = arith.constant 0 : index
    %c0_10 = arith.constant 0 : index
    %c0_11 = arith.constant 0 : index
    %20 = vector.load %arg2[%c0_9, %c0_10, %c0_11] : memref<1x8x64xbf16, #tpu.memory_space<vmem>>, vector<1x8x16xbf16>
    %21 = vector.shape_cast %20 : vector<1x8x16xbf16> to vector<8x16xbf16>
    %22 = vector.shape_cast %19 : vector<8x16xbf16> to vector<1x8x16xbf16>
    tpu.vector_store %arg2[%c0_9, %c0_10, %c0_11], %22 {strides = array<i32>} : memref<1x8x64xbf16, #tpu.memory_space<vmem>>, vector<1x8x16xbf16>,
    %c0_12 = arith.constant 0 : index
    %c0_13 = arith.constant 0 : index
    %c16 = arith.constant 16 : index
    %23 = vector.load %arg1[%c0_12, %c0_13, %c16] : memref<1x8x192xbf16, #tpu.memory_space<vmem>>, vector<1x8x16xbf16>
    %24 = vector.shape_cast %23 : vector<1x8x16xbf16> to vector<8x16xbf16>
    %c0_14 = arith.constant 0 : index
    %c0_15 = arith.constant 0 : index
    %c80 = arith.constant 80 : index
    %25 = vector.load %arg1[%c0_14, %c0_15, %c80] : memref<1x8x192xbf16, #tpu.memory_space<vmem>>, vector<1x8x16xbf16>
    %26 = vector.shape_cast %25 : vector<1x8x16xbf16> to vector<8x16xbf16>
    %c0_16 = arith.constant 0 : index
    %c0_17 = arith.constant 0 : index
    %c144 = arith.constant 144 : index
    %27 = vector.load %arg1[%c0_16, %c0_17, %c144] : memref<1x8x192xbf16, #tpu.memory_space<vmem>>, vector<1x8x16xbf16>
    %28 = vector.shape_cast %27 : vector<1x8x16xbf16> to vector<8x16xbf16>
    %cst_18 = arith.constant dense<0.000000e+00> : vector<8x8xf32>
    %29 = tpu.matmul %24, %26, %cst_18 {dimension_numbers = #tpu.dot_dimension_numbers<[1], [1], [0], [0], [0, 0, 1, 0], [], []>} : vector<8x16xbf16>, vector<8x16xbf16>, vector<8x8xf32> -> vector<8x8xf32>
    %cst_19 = arith.constant dense<0xFF800000> : vector<8xf32>
    %30 = vector.multi_reduction <maximumf>, %29, %cst_19 [1] : vector<8x8xf32> to vector<8xf32>
    %31 = vector.shape_cast %30 : vector<8xf32> to vector<8x1xf32>
    %32 = vector.broadcast %31 : vector<8x1xf32> to vector<8x8xf32>
    %33 = arith.subf %29, %32 : vector<8x8xf32>
    %34 = math.exp %33 : vector<8x8xf32>
    %cst_20 = arith.constant dense<0.000000e+00> : vector<8xf32>
    %35 = vector.multi_reduction <add>, %34, %cst_20 [1] : vector<8x8xf32> to vector<8xf32>
    %36 = vector.shape_cast %35 : vector<8xf32> to vector<8x1xf32>
    %37 = tpu.reciprocal %36 {approx = true} : vector<8x1xf32> -> vector<8x1xf32>
    %38 = vector.broadcast %37 : vector<8x1xf32> to vector<8x8xf32>
    %39 = arith.mulf %34, %38 : vector<8x8xf32>
    %40 = arith.truncf %39 : vector<8x8xf32> to vector<8x8xbf16>
    %cst_21 = arith.constant dense<0.000000e+00> : vector<8x16xf32>
    %41 = tpu.matmul %40, %28, %cst_21 {dimension_numbers = #tpu.dot_dimension_numbers<[1], [0], [0], [1], [0, 0, 1, 1], [], []>} : vector<8x8xbf16>, vector<8x16xbf16>, vector<8x16xf32> -> vector<8x16xf32>
    %42 = arith.truncf %41 : vector<8x16xf32> to vector<8x16xbf16>
    %c0_22 = arith.constant 0 : index
    %c0_23 = arith.constant 0 : index
    %c16_24 = arith.constant 16 : index
    %43 = vector.load %arg2[%c0_22, %c0_23, %c16_24] : memref<1x8x64xbf16, #tpu.memory_space<vmem>>, vector<1x8x16xbf16>
    %44 = vector.shape_cast %43 : vector<1x8x16xbf16> to vector<8x16xbf16>
    %45 = vector.shape_cast %42 : vector<8x16xbf16> to vector<1x8x16xbf16>
    tpu.vector_store %arg2[%c0_22, %c0_23, %c16_24], %45 {strides = array<i32>} : memref<1x8x64xbf16, #tpu.memory_space<vmem>>, vector<1x8x16xbf16>,
    %c0_25 = arith.constant 0 : index
    %c0_26 = arith.constant 0 : index
    %c32 = arith.constant 32 : index
    %46 = vector.load %arg1[%c0_25, %c0_26, %c32] : memref<1x8x192xbf16, #tpu.memory_space<vmem>>, vector<1x8x16xbf16>
    %47 = vector.shape_cast %46 : vector<1x8x16xbf16> to vector<8x16xbf16>
    %c0_27 = arith.constant 0 : index
    %c0_28 = arith.constant 0 : index
    %c96 = arith.constant 96 : index
    %48 = vector.load %arg1[%c0_27, %c0_28, %c96] : memref<1x8x192xbf16, #tpu.memory_space<vmem>>, vector<1x8x16xbf16>
    %49 = vector.shape_cast %48 : vector<1x8x16xbf16> to vector<8x16xbf16>
    %c0_29 = arith.constant 0 : index
    %c0_30 = arith.constant 0 : index
    %c160 = arith.constant 160 : index
    %50 = vector.load %arg1[%c0_29, %c0_30, %c160] : memref<1x8x192xbf16, #tpu.memory_space<vmem>>, vector<1x8x16xbf16>
    %51 = vector.shape_cast %50 : vector<1x8x16xbf16> to vector<8x16xbf16>
    %cst_31 = arith.constant dense<0.000000e+00> : vector<8x8xf32>
    %52 = tpu.matmul %47, %49, %cst_31 {dimension_numbers = #tpu.dot_dimension_numbers<[1], [1], [0], [0], [0, 0, 1, 0], [], []>} : vector<8x16xbf16>, vector<8x16xbf16>, vector<8x8xf32> -> vector<8x8xf32>
    %cst_32 = arith.constant dense<0xFF800000> : vector<8xf32>
    %53 = vector.multi_reduction <maximumf>, %52, %cst_32 [1] : vector<8x8xf32> to vector<8xf32>
    %54 = vector.shape_cast %53 : vector<8xf32> to vector<8x1xf32>
    %55 = vector.broadcast %54 : vector<8x1xf32> to vector<8x8xf32>
    %56 = arith.subf %52, %55 : vector<8x8xf32>
    %57 = math.exp %56 : vector<8x8xf32>
    %cst_33 = arith.constant dense<0.000000e+00> : vector<8xf32>
    %58 = vector.multi_reduction <add>, %57, %cst_33 [1] : vector<8x8xf32> to vector<8xf32>
    %59 = vector.shape_cast %58 : vector<8xf32> to vector<8x1xf32>
    %60 = tpu.reciprocal %59 {approx = true} : vector<8x1xf32> -> vector<8x1xf32>
    %61 = vector.broadcast %60 : vector<8x1xf32> to vector<8x8xf32>
    %62 = arith.mulf %57, %61 : vector<8x8xf32>
    %63 = arith.truncf %62 : vector<8x8xf32> to vector<8x8xbf16>
    %cst_34 = arith.constant dense<0.000000e+00> : vector<8x16xf32>
    %64 = tpu.matmul %63, %51, %cst_34 {dimension_numbers = #tpu.dot_dimension_numbers<[1], [0], [0], [1], [0, 0, 1, 1], [], []>} : vector<8x8xbf16>, vector<8x16xbf16>, vector<8x16xf32> -> vector<8x16xf32>
    %65 = arith.truncf %64 : vector<8x16xf32> to vector<8x16xbf16>
    %c0_35 = arith.constant 0 : index
    %c0_36 = arith.constant 0 : index
    %c32_37 = arith.constant 32 : index
    %66 = vector.load %arg2[%c0_35, %c0_36, %c32_37] : memref<1x8x64xbf16, #tpu.memory_space<vmem>>, vector<1x8x16xbf16>
    %67 = vector.shape_cast %66 : vector<1x8x16xbf16> to vector<8x16xbf16>
    %68 = vector.shape_cast %65 : vector<8x16xbf16> to vector<1x8x16xbf16>
    tpu.vector_store %arg2[%c0_35, %c0_36, %c32_37], %68 {strides = array<i32>} : memref<1x8x64xbf16, #tpu.memory_space<vmem>>, vector<1x8x16xbf16>,
    %c0_38 = arith.constant 0 : index
    %c0_39 = arith.constant 0 : index
    %c48 = arith.constant 48 : index
    %69 = vector.load %arg1[%c0_38, %c0_39, %c48] : memref<1x8x192xbf16, #tpu.memory_space<vmem>>, vector<1x8x16xbf16>
    %70 = vector.shape_cast %69 : vector<1x8x16xbf16> to vector<8x16xbf16>
    %c0_40 = arith.constant 0 : index
    %c0_41 = arith.constant 0 : index
    %c112 = arith.constant 112 : index
    %71 = vector.load %arg1[%c0_40, %c0_41, %c112] : memref<1x8x192xbf16, #tpu.memory_space<vmem>>, vector<1x8x16xbf16>
    %72 = vector.shape_cast %71 : vector<1x8x16xbf16> to vector<8x16xbf16>
    %c0_42 = arith.constant 0 : index
    %c0_43 = arith.constant 0 : index
    %c176 = arith.constant 176 : index
    %73 = vector.load %arg1[%c0_42, %c0_43, %c176] : memref<1x8x192xbf16, #tpu.memory_space<vmem>>, vector<1x8x16xbf16>
    %74 = vector.shape_cast %73 : vector<1x8x16xbf16> to vector<8x16xbf16>
    %cst_44 = arith.constant dense<0.000000e+00> : vector<8x8xf32>
    %75 = tpu.matmul %70, %72, %cst_44 {dimension_numbers = #tpu.dot_dimension_numbers<[1], [1], [0], [0], [0, 0, 1, 0], [], []>} : vector<8x16xbf16>, vector<8x16xbf16>, vector<8x8xf32> -> vector<8x8xf32>
    %cst_45 = arith.constant dense<0xFF800000> : vector<8xf32>
    %76 = vector.multi_reduction <maximumf>, %75, %cst_45 [1] : vector<8x8xf32> to vector<8xf32>
    %77 = vector.shape_cast %76 : vector<8xf32> to vector<8x1xf32>
    %78 = vector.broadcast %77 : vector<8x1xf32> to vector<8x8xf32>
    %79 = arith.subf %75, %78 : vector<8x8xf32>
    %80 = math.exp %79 : vector<8x8xf32>
    %cst_46 = arith.constant dense<0.000000e+00> : vector<8xf32>
    %81 = vector.multi_reduction <add>, %80, %cst_46 [1] : vector<8x8xf32> to vector<8xf32>
    %82 = vector.shape_cast %81 : vector<8xf32> to vector<8x1xf32>
    %83 = tpu.reciprocal %82 {approx = true} : vector<8x1xf32> -> vector<8x1xf32>
    %84 = vector.broadcast %83 : vector<8x1xf32> to vector<8x8xf32>
    %85 = arith.mulf %80, %84 : vector<8x8xf32>
    %86 = arith.truncf %85 : vector<8x8xf32> to vector<8x8xbf16>
    %cst_47 = arith.constant dense<0.000000e+00> : vector<8x16xf32>
    %87 = tpu.matmul %86, %74, %cst_47 {dimension_numbers = #tpu.dot_dimension_numbers<[1], [0], [0], [1], [0, 0, 1, 1], [], []>} : vector<8x8xbf16>, vector<8x16xbf16>, vector<8x16xf32> -> vector<8x16xf32>
    %88 = arith.truncf %87 : vector<8x16xf32> to vector<8x16xbf16>
    %c0_48 = arith.constant 0 : index
    %c0_49 = arith.constant 0 : index
    %c48_50 = arith.constant 48 : index
    %89 = vector.load %arg2[%c0_48, %c0_49, %c48_50] : memref<1x8x64xbf16, #tpu.memory_space<vmem>>, vector<1x8x16xbf16>
    %90 = vector.shape_cast %89 : vector<1x8x16xbf16> to vector<8x16xbf16>
    %91 = vector.shape_cast %88 : vector<8x16xbf16> to vector<1x8x16xbf16>
    tpu.vector_store %arg2[%c0_48, %c0_49, %c48_50], %91 {strides = array<i32>} : memref<1x8x64xbf16, #tpu.memory_space<vmem>>, vector<1x8x16xbf16>,
    return
  }
  func.func @transform_0(%arg0: i32) -> (i32, i32, i32) {
    %c0_i32 = arith.constant 0 : i32
    %c0_i32_0 = arith.constant 0 : i32
    %c0_i32_1 = arith.constant 0 : i32
    return %arg0, %c0_i32, %c0_i32_0 : i32, i32, i32
  }
  func.func @transform_1(%arg0: i32) -> (i32, i32, i32) {
    %c0_i32 = arith.constant 0 : i32
    %c0_i32_0 = arith.constant 0 : i32
    %c0_i32_1 = arith.constant 0 : i32
    return %arg0, %c0_i32, %c0_i32_0 : i32, i32, i32
  }
}

module attributes {stable_mosaic.version = 11 : i64} {
  func.func @_matmul_kernel(%arg0: i32, %arg1: i32, %arg2: i32, %arg3: memref<16x64xbf16, #tpu.memory_space<vmem>>, %arg4: memref<64x32xbf16, #tpu.memory_space<vmem>>, %arg5: memref<1x32xf32, #tpu.memory_space<vmem>>, %arg6: memref<16x32xf32, #tpu.memory_space<vmem>>, %arg7: memref<16x32xf32, #tpu.memory_space<vmem>>) attributes {dimension_semantics = [#tpu.dimension_semantics<parallel>, #tpu.dimension_semantics<parallel>, #tpu.dimension_semantics<arbitrary>], iteration_bounds = array<i64: 1, 1, 1>, scalar_prefetch = 0 : i64, scratch_operands = 0 : i64, tpu.core_type = #tpu.core_type<tc>, window_params = [{transform_indices = @transform_0, window_bounds = array<i64: 16, 64>}, {transform_indices = @transform_1, window_bounds = array<i64: 64, 32>}, {transform_indices = @transform_2, window_bounds = array<i64: 1, 32>}, {transform_indices = @transform_3, window_bounds = array<i64: 16, 32>}, {transform_indices = @transform_4, window_bounds = array<i64: 16, 32>}]} {
    %c0 = arith.constant 0 : index
    %c0_0 = arith.constant 0 : index
    %0 = vector.load %arg3[%c0, %c0_0] : memref<16x64xbf16, #tpu.memory_space<vmem>>, vector<16x64xbf16>
    %c0_1 = arith.constant 0 : index
    %c0_2 = arith.constant 0 : index
    %1 = vector.load %arg4[%c0_1, %c0_2] : memref<64x32xbf16, #tpu.memory_space<vmem>>, vector<64x32xbf16>
    %cst = arith.constant dense<0.000000e+00> : vector<16x32xf32>
    %2 = tpu.matmul %0, %1, %cst {dimension_numbers = #tpu.dot_dimension_numbers<[1], [0], [0], [1], [0, 0, 1, 1], [], []>} : vector<16x64xbf16>, vector<64x32xbf16>, vector<16x32xf32> -> vector<16x32xf32>
    %c0_3 = arith.constant 0 : index
    %c0_4 = arith.constant 0 : index
    %3 = vector.load %arg5[%c0_3, %c0_4] : memref<1x32xf32, #tpu.memory_space<vmem>>, vector<1x32xf32>
    %4 = vector.broadcast %3 : vector<1x32xf32> to vector<16x32xf32>
    %5 = arith.addf %2, %4 : vector<16x32xf32>
    %c0_5 = arith.constant 0 : index
    %c0_6 = arith.constant 0 : index
    %6 = vector.load %arg6[%c0_5, %c0_6] : memref<16x32xf32, #tpu.memory_space<vmem>>, vector<16x32xf32>
    %7 = arith.addf %5, %6 : vector<16x32xf32>
    %c0_7 = arith.constant 0 : index
    %c0_8 = arith.constant 0 : index
    %8 = vector.load %arg7[%c0_7, %c0_8] : memref<16x32xf32, #tpu.memory_space<vmem>>, vector<16x32xf32>
    tpu.vector_store %arg7[%c0_7, %c0_8], %7 {strides = array<i32>} : memref<16x32xf32, #tpu.memory_space<vmem>>, vector<16x32xf32>,
    return
  }
  func.func @transform_0(%arg0: i32, %arg1: i32, %arg2: i32) -> (i32, i32) {
    %c0_i32 = arith.constant 0 : i32
    return %arg0, %arg2 : i32, i32
  }
  func.func @transform_1(%arg0: i32, %arg1: i32, %arg2: i32) -> (i32, i32) {
    %c0_i32 = arith.constant 0 : i32
    return %arg2, %arg1 : i32, i32
  }
  func.func @transform_2(%arg0: i32, %arg1: i32, %arg2: i32) -> (i32, i32) {
    %c0_i32 = arith.constant 0 : i32
    %c0_i32_0 = arith.constant 0 : i32
    return %c0_i32, %arg1 : i32, i32
  }
  func.func @transform_3(%arg0: i32, %arg1: i32, %arg2: i32) -> (i32, i32) {
    %c0_i32 = arith.constant 0 : i32
    return %arg0, %arg1 : i32, i32
  }
  func.func @transform_4(%arg0: i32, %arg1: i32, %arg2: i32) -> (i32, i32) {
    %c0_i32 = arith.constant 0 : i32
    return %arg0, %arg1 : i32, i32
  }
}

module attributes {stable_mosaic.version = 11 : i64} {
  func.func @_matmul_kernel(%arg0: i32, %arg1: i32, %arg2: i32, %arg3: memref<16x64xbf16, #tpu.memory_space<vmem>>, %arg4: memref<64x32xbf16, #tpu.memory_space<vmem>>, %arg5: memref<16x32xf32, #tpu.memory_space<vmem>>, %arg6: memref<16x32xf32, #tpu.memory_space<vmem>>) attributes {dimension_semantics = [#tpu.dimension_semantics<parallel>, #tpu.dimension_semantics<parallel>, #tpu.dimension_semantics<arbitrary>], iteration_bounds = array<i64: 1, 1, 1>, scalar_prefetch = 0 : i64, scratch_operands = 0 : i64, tpu.core_type = #tpu.core_type<tc>, window_params = [{transform_indices = @transform_0, window_bounds = array<i64: 16, 64>}, {transform_indices = @transform_1, window_bounds = array<i64: 64, 32>}, {transform_indices = @transform_2, window_bounds = array<i64: 16, 32>}, {transform_indices = @transform_3, window_bounds = array<i64: 16, 32>}]} {
    %c0 = arith.constant 0 : index
    %c0_0 = arith.constant 0 : index
    %0 = vector.load %arg3[%c0, %c0_0] : memref<16x64xbf16, #tpu.memory_space<vmem>>, vector<16x64xbf16>
    %c0_1 = arith.constant 0 : index
    %c0_2 = arith.constant 0 : index
    %1 = vector.load %arg4[%c0_1, %c0_2] : memref<64x32xbf16, #tpu.memory_space<vmem>>, vector<64x32xbf16>
    %cst = arith.constant dense<0.000000e+00> : vector<16x32xf32>
    %2 = tpu.matmul %0, %1, %cst {dimension_numbers = #tpu.dot_dimension_numbers<[1], [0], [0], [1], [0, 0, 1, 1], [], []>} : vector<16x64xbf16>, vector<64x32xbf16>, vector<16x32xf32> -> vector<16x32xf32>
    %c0_3 = arith.constant 0 : index
    %c0_4 = arith.constant 0 : index
    %3 = vector.load %arg5[%c0_3, %c0_4] : memref<16x32xf32, #tpu.memory_space<vmem>>, vector<16x32xf32>
    %4 = arith.addf %2, %3 : vector<16x32xf32>
    %c0_5 = arith.constant 0 : index
    %c0_6 = arith.constant 0 : index
    %5 = vector.load %arg6[%c0_5, %c0_6] : memref<16x32xf32, #tpu.memory_space<vmem>>, vector<16x32xf32>
    tpu.vector_store %arg6[%c0_5, %c0_6], %4 {strides = array<i32>} : memref<16x32xf32, #tpu.memory_space<vmem>>, vector<16x32xf32>,
    return
  }
  func.func @transform_0(%arg0: i32, %arg1: i32, %arg2: i32) -> (i32, i32) {
    %c0_i32 = arith.constant 0 : i32
    return %arg0, %arg2 : i32, i32
  }
  func.func @transform_1(%arg0: i32, %arg1: i32, %arg2: i32) -> (i32, i32) {
    %c0_i32 = arith.constant 0 : i32
    return %arg2, %arg1 : i32, i32
  }
  func.func @transform_2(%arg0: i32, %arg1: i32, %arg2: i32) -> (i32, i32) {
    %c0_i32 = arith.constant 0 : i32
    return %arg0, %arg1 : i32, i32
  }
  func.func @transform_3(%arg0: i32, %arg1: i32, %arg2: i32) -> (i32, i32) {
    %c0_i32 = arith.constant 0 : i32
    return %arg0, %arg1 : i32, i32
  }
}

module attributes {stable_mosaic.version = 11 : i64} {
  func.func @_layernorm_kernel(%arg0: i32, %arg1: memref<16x32xf32, #tpu.memory_space<vmem>>, %arg2: memref<1x32xf32, #tpu.memory_space<vmem>>, %arg3: memref<1x32xf32, #tpu.memory_space<vmem>>, %arg4: memref<16x32xf32, #tpu.memory_space<vmem>>) attributes {dimension_semantics = [#tpu.dimension_semantics<parallel>], iteration_bounds = array<i64: 1>, scalar_prefetch = 0 : i64, scratch_operands = 0 : i64, tpu.core_type = #tpu.core_type<tc>, window_params = [{transform_indices = @transform_0, window_bounds = array<i64: 16, 32>}, {pipeline_mode = #tpu.pipeline_mode<synchronous>, transform_indices = @transform_1, window_bounds = array<i64: 1, 32>}, {pipeline_mode = #tpu.pipeline_mode<synchronous>, transform_indices = @transform_2, window_bounds = array<i64: 1, 32>}, {transform_indices = @transform_3, window_bounds = array<i64: 16, 32>}]} {
    %c0 = arith.constant 0 : index
    %c0_0 = arith.constant 0 : index
    %0 = vector.load %arg1[%c0, %c0_0] : memref<16x32xf32, #tpu.memory_space<vmem>>, vector<16x32xf32>
    %cst = arith.constant dense<0.000000e+00> : vector<16xf32>
    %1 = vector.multi_reduction <add>, %0, %cst [1] : vector<16x32xf32> to vector<16xf32>
    %2 = vector.shape_cast %1 : vector<16xf32> to vector<16x1xf32>
    %cst_1 = arith.constant 3.200000e+01 : f32
    %3 = vector.broadcast %cst_1 : f32 to vector<16x1xf32>
    %4 = arith.divf %2, %3 : vector<16x1xf32>
    %5 = vector.broadcast %4 : vector<16x1xf32> to vector<16x32xf32>
    %6 = arith.subf %0, %5 : vector<16x32xf32>
    %7 = arith.mulf %6, %6 : vector<16x32xf32>
    %cst_2 = arith.constant dense<0.000000e+00> : vector<16xf32>
    %8 = vector.multi_reduction <add>, %7, %cst_2 [1] : vector<16x32xf32> to vector<16xf32>
    %9 = vector.shape_cast %8 : vector<16xf32> to vector<16x1xf32>
    %cst_3 = arith.constant 3.200000e+01 : f32
    %10 = vector.broadcast %cst_3 : f32 to vector<16x1xf32>
    %11 = arith.divf %9, %10 : vector<16x1xf32>
    %12 = vector.broadcast %4 : vector<16x1xf32> to vector<16x32xf32>
    %13 = arith.subf %0, %12 : vector<16x32xf32>
    %cst_4 = arith.constant 9.99999974E-6 : f32
    %14 = vector.broadcast %cst_4 : f32 to vector<16x1xf32>
    %15 = arith.addf %11, %14 : vector<16x1xf32>
    %16 = math.rsqrt %15 : vector<16x1xf32>
    %17 = vector.broadcast %16 : vector<16x1xf32> to vector<16x32xf32>
    %18 = arith.mulf %13, %17 : vector<16x32xf32>
    %c0_5 = arith.constant 0 : index
    %c0_6 = arith.constant 0 : index
    %19 = vector.load %arg2[%c0_5, %c0_6] : memref<1x32xf32, #tpu.memory_space<vmem>>, vector<1x32xf32>
    %20 = vector.broadcast %19 : vector<1x32xf32> to vector<16x32xf32>
    %21 = arith.mulf %18, %20 : vector<16x32xf32>
    %c0_7 = arith.constant 0 : index
    %c0_8 = arith.constant 0 : index
    %22 = vector.load %arg3[%c0_7, %c0_8] : memref<1x32xf32, #tpu.memory_space<vmem>>, vector<1x32xf32>
    %23 = vector.broadcast %22 : vector<1x32xf32> to vector<16x32xf32>
    %24 = arith.addf %21, %23 : vector<16x32xf32>
    %c0_9 = arith.constant 0 : index
    %c0_10 = arith.constant 0 : index
    %25 = vector.load %arg4[%c0_9, %c0_10] : memref<16x32xf32, #tpu.memory_space<vmem>>, vector<16x32xf32>
    tpu.vector_store %arg4[%c0_9, %c0_10], %24 {strides = array<i32>} : memref<16x32xf32, #tpu.memory_space<vmem>>, vector<16x32xf32>,
    return
  }
  func.func @transform_0(%arg0: i32) -> (i32, i32) {
    %c0_i32 = arith.constant 0 : i32
    %c0_i32_0 = arith.constant 0 : i32
    return %arg0, %c0_i32 : i32, i32
  }
  func.func @transform_1(%arg0: i32) -> (i32, i32) {
    %c0_i32 = arith.constant 0 : i32
    %c0_i32_0 = arith.constant 0 : i32
    %c0_i32_1 = arith.constant 0 : i32
    return %c0_i32, %c0_i32_0 : i32, i32
  }
  func.func @transform_2(%arg0: i32) -> (i32, i32) {
    %c0_i32 = arith.constant 0 : i32
    %c0_i32_0 = arith.constant 0 : i32
    %c0_i32_1 = arith.constant 0 : i32
    return %c0_i32, %c0_i32_0 : i32, i32
  }
  func.func @transform_3(%arg0: i32) -> (i32, i32) {
    %c0_i32 = arith.constant 0 : i32
    %c0_i32_0 = arith.constant 0 : i32
    return %arg0, %c0_i32 : i32, i32
  }
}

module attributes {stable_mosaic.version = 11 : i64} {
  func.func @_matmul_kernel(%arg0: i32, %arg1: i32, %arg2: i32, %arg3: memref<16x32xf32, #tpu.memory_space<vmem>>, %arg4: memref<32x64xbf16, #tpu.memory_space<vmem>>, %arg5: memref<1x32xf32, #tpu.memory_space<vmem>>, %arg6: memref<1x32xf32, #tpu.memory_space<vmem>>, %arg7: memref<1x64xf32, #tpu.memory_space<vmem>>, %arg8: memref<16x64xbf16, #tpu.memory_space<vmem>>) attributes {dimension_semantics = [#tpu.dimension_semantics<parallel>, #tpu.dimension_semantics<parallel>, #tpu.dimension_semantics<arbitrary>], iteration_bounds = array<i64: 1, 1, 1>, scalar_prefetch = 0 : i64, scratch_operands = 0 : i64, tpu.core_type = #tpu.core_type<tc>, window_params = [{transform_indices = @transform_0, window_bounds = array<i64: 16, 32>}, {transform_indices = @transform_1, window_bounds = array<i64: 32, 64>}, {pipeline_mode = #tpu.pipeline_mode<synchronous>, transform_indices = @transform_2, window_bounds = array<i64: 1, 32>}, {pipeline_mode = #tpu.pipeline_mode<synchronous>, transform_indices = @transform_3, window_bounds = array<i64: 1, 32>}, {transform_indices = @transform_4, window_bounds = array<i64: 1, 64>}, {transform_indices = @transform_5, window_bounds = array<i64: 16, 64>}]} {
    %c0 = arith.constant 0 : index
    %c0_0 = arith.constant 0 : index
    %0 = vector.load %arg3[%c0, %c0_0] : memref<16x32xf32, #tpu.memory_space<vmem>>, vector<16x32xf32>
    %cst = arith.constant dense<0.000000e+00> : vector<16xf32>
    %1 = vector.multi_reduction <add>, %0, %cst [1] : vector<16x32xf32> to vector<16xf32>
    %2 = vector.shape_cast %1 : vector<16xf32> to vector<16x1xf32>
    %cst_1 = arith.constant 3.200000e+01 : f32
    %3 = vector.broadcast %cst_1 : f32 to vector<16x1xf32>
    %4 = arith.divf %2, %3 : vector<16x1xf32>
    %5 = vector.broadcast %4 : vector<16x1xf32> to vector<16x32xf32>
    %6 = arith.subf %0, %5 : vector<16x32xf32>
    %7 = arith.mulf %6, %6 : vector<16x32xf32>
    %cst_2 = arith.constant dense<0.000000e+00> : vector<16xf32>
    %8 = vector.multi_reduction <add>, %7, %cst_2 [1] : vector<16x32xf32> to vector<16xf32>
    %9 = vector.shape_cast %8 : vector<16xf32> to vector<16x1xf32>
    %cst_3 = arith.constant 3.200000e+01 : f32
    %10 = vector.broadcast %cst_3 : f32 to vector<16x1xf32>
    %11 = arith.divf %9, %10 : vector<16x1xf32>
    %12 = vector.broadcast %4 : vector<16x1xf32> to vector<16x32xf32>
    %13 = arith.subf %0, %12 : vector<16x32xf32>
    %cst_4 = arith.constant 9.99999974E-6 : f32
    %14 = vector.broadcast %cst_4 : f32 to vector<16x1xf32>
    %15 = arith.addf %11, %14 : vector<16x1xf32>
    %16 = math.rsqrt %15 : vector<16x1xf32>
    %17 = vector.broadcast %16 : vector<16x1xf32> to vector<16x32xf32>
    %18 = arith.mulf %13, %17 : vector<16x32xf32>
    %c0_5 = arith.constant 0 : index
    %c0_6 = arith.constant 0 : index
    %19 = vector.load %arg5[%c0_5, %c0_6] : memref<1x32xf32, #tpu.memory_space<vmem>>, vector<1x32xf32>
    %20 = vector.broadcast %19 : vector<1x32xf32> to vector<16x32xf32>
    %21 = arith.mulf %18, %20 : vector<16x32xf32>
    %c0_7 = arith.constant 0 : index
    %c0_8 = arith.constant 0 : index
    %22 = vector.load %arg6[%c0_7, %c0_8] : memref<1x32xf32, #tpu.memory_space<vmem>>, vector<1x32xf32>
    %23 = vector.broadcast %22 : vector<1x32xf32> to vector<16x32xf32>
    %24 = arith.addf %21, %23 : vector<16x32xf32>
    %25 = arith.truncf %24 : vector<16x32xf32> to vector<16x32xbf16>
    %c0_9 = arith.constant 0 : index
    %c0_10 = arith.constant 0 : index
    %26 = vector.load %arg4[%c0_9, %c0_10] : memref<32x64xbf16, #tpu.memory_space<vmem>>, vector<32x64xbf16>
    %cst_11 = arith.constant dense<0.000000e+00> : vector<16x64xf32>
    %27 = tpu.matmul %25, %26, %cst_11 {dimension_numbers = #tpu.dot_dimension_numbers<[1], [0], [0], [1], [0, 0, 1, 1], [], []>} : vector<16x32xbf16>, vector<32x64xbf16>, vector<16x64xf32> -> vector<16x64xf32>
    %c0_12 = arith.constant 0 : index
    %c0_13 = arith.constant 0 : index
    %28 = vector.load %arg7[%c0_12, %c0_13] : memref<1x64xf32, #tpu.memory_space<vmem>>, vector<1x64xf32>
    %29 = vector.broadcast %28 : vector<1x64xf32> to vector<16x64xf32>
    %30 = arith.addf %27, %29 : vector<16x64xf32>
    %31 = arith.mulf %30, %30 : vector<16x64xf32>
    %32 = arith.mulf %30, %31 : vector<16x64xf32>
    %cst_14 = arith.constant 4.471500e-02 : f32
    %33 = vector.broadcast %cst_14 : f32 to vector<16x64xf32>
    %34 = arith.mulf %33, %32 : vector<16x64xf32>
    %35 = arith.addf %30, %34 : vector<16x64xf32>
    %cst_15 = arith.constant 0.797884583 : f32
    %36 = vector.broadcast %cst_15 : f32 to vector<16x64xf32>
    %37 = arith.mulf %36, %35 : vector<16x64xf32>
    %38 = math.tanh %37 : vector<16x64xf32>
    %cst_16 = arith.constant 1.000000e+00 : f32
    %39 = vector.broadcast %cst_16 : f32 to vector<16x64xf32>
    %40 = arith.addf %39, %38 : vector<16x64xf32>
    %cst_17 = arith.constant 5.000000e-01 : f32
    %41 = vector.broadcast %cst_17 : f32 to vector<16x64xf32>
    %42 = arith.mulf %41, %40 : vector<16x64xf32>
    %43 = arith.mulf %30, %42 : vector<16x64xf32>
    %44 = arith.truncf %43 : vector<16x64xf32> to vector<16x64xbf16>
    %c0_18 = arith.constant 0 : index
    %c0_19 = arith.constant 0 : index
    %45 = vector.load %arg8[%c0_18, %c0_19] : memref<16x64xbf16, #tpu.memory_space<vmem>>, vector<16x64xbf16>
    tpu.vector_store %arg8[%c0_18, %c0_19], %44 {strides = array<i32>} : memref<16x64xbf16, #tpu.memory_space<vmem>>, vector<16x64xbf16>,
    return
  }
  func.func @transform_0(%arg0: i32, %arg1: i32, %arg2: i32) -> (i32, i32) {
    %c0_i32 = arith.constant 0 : i32
    return %arg0, %arg2 : i32, i32
  }
  func.func @transform_1(%arg0: i32, %arg1: i32, %arg2: i32) -> (i32, i32) {
    %c0_i32 = arith.constant 0 : i32
    return %arg2, %arg1 : i32, i32
  }
  func.func @transform_2(%arg0: i32, %arg1: i32, %arg2: i32) -> (i32, i32) {
    %c0_i32 = arith.constant 0 : i32
    %c0_i32_0 = arith.constant 0 : i32
    %c0_i32_1 = arith.constant 0 : i32
    return %c0_i32, %c0_i32_0 : i32, i32
  }
  func.func @transform_3(%arg0: i32, %arg1: i32, %arg2: i32) -> (i32, i32) {
    %c0_i32 = arith.constant 0 : i32
    %c0_i32_0 = arith.constant 0 : i32
    %c0_i32_1 = arith.constant 0 : i32
    return %c0_i32, %c0_i32_0 : i32, i32
  }
  func.func @transform_4(%arg0: i32, %arg1: i32, %arg2: i32) -> (i32, i32) {
    %c0_i32 = arith.constant 0 : i32
    %c0_i32_0 = arith.constant 0 : i32
    return %c0_i32, %arg1 : i32, i32
  }
  func.func @transform_5(%arg0: i32, %arg1: i32, %arg2: i32) -> (i32, i32) {
    %c0_i32 = arith.constant 0 : i32
    return %arg0, %arg1 : i32, i32
  }
}

</mosaic_0001>

<bundles_post_ra>
// kernel: action_recognition_forward.15
= control target key start
LH: loop header
LB: loop body
LE: loop exit
PB: predicated region body
PF: predicated region fallthrough
CT: control target
= control target key end

     0   :  { %vm20_vm0 = vcmask 261120   ;;  %v180_v18 = vmov 0   ;;  %vm149_vm1 = vcmask 1043456   ;;  %vm150_vm2 = vcmask 523268   ;;  %s241_s0 = inlined_call_operand.vmem [shape: f32[16,32], index: 0, kind: input, shape index: {}]   ;;  %s242_s1 = inlined_call_operand.vmem [shape: bf16[32,192], index: 1, kind: input, shape index: {}]   ;;  %s243_s2 = inlined_call_operand.vmem [shape: f32[1,32], index: 2, kind: input, shape index: {}]   ;;  %s244_s3 = inlined_call_operand.vmem [shape: f32[1,32], index: 3, kind: input, shape index: {}]   ;;  %s245_s4 = inlined_call_operand.vmem [shape: bf16[16,192], index: 4, kind: output, shape index: {}]  }
   0x1   :  { %v18_v0 = vld [vmem:[%s241_s0] sm:$0xff]  ;;  %v19_v1 = vld [vmem:[%s241_s0 + $0x8] sm:$0xff]  ;;  %v173_v16 = vld [vmem:[%s242_s1 + $0x14] ss:$8 sps:$4 sm:$0xff]   ;;  %126 = vmatprep.mubr.bf16.mxu0 %v180_v18 }
   0x2   :  { %v21_v2 = vsel %vm20_vm0, %v18_v0, 0.0  ;;  %v24_v3 = vsel %vm20_vm0, %v19_v1, 0.0  ;;  %v170_v14 = vld [vmem:[%s242_s1 + $0x4] ss:$8 sps:$4 sm:$0xff]   ;;  %v172_v15 = vld [vmem:[%s242_s1] ss:$8 sps:$4 sm:$0xff]   ;;  %vm151_vm3 = vmor %vm150_vm2, %vm149_vm1 }
   0x3   :  { %22 = vadd.xlane.f32.xlu0 %v21_v2  ;;  %94 = vmatprep.subr.bf16.mxu0 %v170_v14  ;;  %v175_v17 = vld [vmem:[%s242_s1 + $0x10] ss:$8 sps:$4 sm:$0xff]   ;;  %v158_v27 = vld [vmem:[%s243_s2] ss:$0 sm:$0xff] }
   0x4   :  { %95 = vmatpush1.bf16.msra.mxu0 %v172_v15  ;;  %v159_v31 = vld [vmem:[%s244_s3] ss:$0 sm:$0xff] }
   0x5   :  { %96 = vmatprep.subr.bf16.mxu0 %v173_v16 }
   0x7   :  { %25 = vadd.xlane.f32.xlu0 %v24_v3 }
   0x8   :  { %97 = vmatpush1.bf16.msra.mxu0 %v175_v17 }
  0x90   :  { %v23_v4 = vpop.xlane.xlu0 %22 }
  0x91   :  { %v28_v5 = vmul.f32 0.03125, %v23_v4 }
  0x93   :  { %v30_v6 = vsub.f32 %v18_v0, %v28_v5 }
  0x94   :  { %v26_v7 = vpop.xlane.xlu0 %25 }
  0x95   :  { %v29_v8 = vmul.f32 0.03125, %v26_v7  ;;  %v32_v9 = vmul.f32 %v30_v6, %v30_v6 }
  0x97   :  { %v31_v10 = vsub.f32 %v19_v1, %v29_v8  ;;  %v34_v11 = vsel %vm20_vm0, %v32_v9, 0.0 }
  0x98   :  { %35 = vadd.xlane.f32.xlu1 %v34_v11 }
  0x99   :  { %v33_v12 = vmul.f32 %v31_v10, %v31_v10 }
  0x9b   :  { %v37_v13 = vsel %vm20_vm0, %v33_v12, 0.0 }
  0x9c   :  { %38 = vadd.xlane.f32.xlu1 %v37_v13 }
 0x125   :  { %v36_v19 = vpop.xlane.xlu1 %35 }
 0x126   :  { %v40_v20 = vmul.f32 0.03125, %v36_v19 }
 0x128   :  { %v42_v21 = vadd.f32 1e-05, %v40_v20 }
 0x129   :  { %v39_v22 = vpop.xlane.xlu1 %38 }
 0x12a   :  { %176 = vrsqrt.f32 %v42_v21  ;;  %v41_v23 = vmul.f32 0.03125, %v39_v22 }
 0x12c   :  { %v43_v24 = vadd.f32 1e-05, %v41_v23 }
 0x12e   :  { %178 = vrsqrt.f32 %v43_v24 }
 0x134   :  { %v177_v25 = vpop.eup %176 }
 0x135   :  { %v46_v26 = vmul.f32 %v177_v25, %v30_v6 }
 0x137   :  { %v55_v30 = vmul.f32 %v158_v27, %v46_v26 }
 0x138   :  { %v179_v28 = vpop.eup %178 }
 0x139   :  { %v47_v29 = vmul.f32 %v179_v28, %v31_v10  ;;  %v64_v33 = vadd.f32 %v159_v31, %v55_v30 }
 0x13b   :  { %v56_v32 = vmul.f32 %v158_v27, %v47_v29 }
 0x13d   :  { %v65_v34 = vadd.f32 %v159_v31, %v56_v32 }
 0x13f   :  { %v66_v35 = vpack.c.bf16 %v65_v34, %v64_v33 }
 0x141   :  { %164 = vmatmul.mubr.msk.bf16.vlgmr.msra.gmra.mrb[0].mxu0 %vm20_vm0, %v66_v35 }
 0x214   :  { %v128_v36 = vpop.f32.mrb[0].mxu0 }
 0x215   :  { %v130_v37 = vpop.f32.mrb[1].mxu0 }
 0x216   :  { %v167_v38 = vpack.c.bf16 %v130_v37, %v128_v36  ;;  %v132_v39 = vpop.f32.mrb[2].mxu0 }
 0x217   :  { %v134_v40 = vpop.f32.mrb[3].mxu0 }
 0x218   :  { %152 = vst.msk [vmem:[%s245_s4] sm:$0xff] %vm151_vm3, %v167_v38  ;;  %v168_v41 = vpack.c.bf16 %v134_v40, %v132_v39 }
 0x21a   :  { %153 = vst.msk [vmem:[%s245_s4 + $0x8] sm:$0xff] %vm151_vm3, %v168_v41 }

// kernel: action_recognition_forward.14
= control target key start
LH: loop header
LB: loop body
LE: loop exit
PB: predicated region body
PF: predicated region fallthrough
CT: control target
= control target key end

     0   :  { %s453_s15 = smov 0   ;;  %s455_s16 = smov 0   ;;  %s498_s0 = inlined_call_operand.vmem [shape: f32[2,8,32], index: 0, kind: input, shape index: {}]   ;;  %s499_s1 = inlined_call_operand.vmem [shape: f32[1,32], index: 1, kind: input, shape index: {}]   ;;  %s500_s2 = inlined_call_operand.vmem [shape: f32[1,32], index: 2, kind: input, shape index: {}]   ;;  %s501_s3 = inlined_call_operand.vmem [shape: f32[8,32], index: 3, kind: input, shape index: {}]   ;;  %s502_s4 = inlined_call_operand.vmem [shape: f32[2,8,32], index: 4, kind: output, shape index: {}]  }
   0x1   :  { %s457_s17 = smov 0  }
   0x2 LB: > { %s26_s18 = sadd.s32 1, %s422_s16  ;;  %p371_p0 = scmp.ge.s32.totalorder %s426_s17, 1  ;;  %s426_s17 = sphi %s457_s17, %s14_s17   ;;  %s422_s16 = sphi %s455_s16, %s504_s16   ;;  %s418_s15 = sphi %s453_s15, %s503_s15  }
   0x3   : > { %p28_p1 = scmp.ge.s32.totalorder %s26_s18, 2  ;;  %p189_p2 = scmp.lt.s32.totalorder %s426_s17, 3 }
   0x5   : > { %s506_s18 = smov (%p28_p1, %s26_s18), 0  ;;  %p190_p3 = pnand %p371_p0, %p189_p2 }
   0x6   : > { %p223_p4 = scmp.lt.s32.totalorder (!%p190_p3), %s418_s15, 1  ;;  %vm242_vm0 = vcmask (!%p190_p3), 261120   ;;  %v374_v11 = vld [vmem:[%s499_s1] ss:$0 sm:$0xff] (!%p190_p3) }
   0x7   : > { %193 = sbr.rel (%p190_p3) target bundleno = 334 (0x14e), region = 36  ;;  %v375_v13 = vld [vmem:[%s500_s2] ss:$0 sm:$0xff] (!%p190_p3) }
   0x8   : > { %v273_v15 = vld [vmem:[%s501_s3] sm:$0xff] (!%p190_p3) }
   0xe   : > { %s508_s15 = smov (!%p223_p4, %s418_s15), 1 }
   0xf   : > { %s372_s19 = sshll.u32 %s508_s15, 3 }
  0x10   : > { %s229_s22 = scalar_lea.vmem %s498_s0, %s372_s19  ;;  %s240_s5 = scalar_lea.vmem %s502_s4, %s372_s19 }
  0x11   : > { %v241_v0 = vld [vmem:[%s229_s22] sm:$0xff] }
  0x12   : > { %v243_v1 = vsel %vm242_vm0, %v241_v0, 0.0 }
  0x13   : > { %244 = vadd.xlane.f32.xlu0 %v243_v1 }
  0xa0   : > { %v245_v2 = vpop.xlane.xlu0 %244 }
  0xa1   : > { %v247_v3 = vmul.f32 0.03125, %v245_v2 }
  0xa3   : > { %v248_v4 = vsub.f32 %v241_v0, %v247_v3 }
  0xa5   : > { %v249_v5 = vmul.f32 %v248_v4, %v248_v4 }
  0xa7   : > { %v250_v6 = vsel %vm242_vm0, %v249_v5, 0.0 }
  0xa8   : > { %251 = vadd.xlane.f32.xlu0 %v250_v6 }
 0x135   : > { %v252_v7 = vpop.xlane.xlu0 %251 }
 0x136   : > { %v253_v8 = vmul.f32 0.03125, %v252_v7 }
 0x138   : > { %v254_v9 = vadd.f32 1e-05, %v253_v8 }
 0x13a   : > { %402 = vrsqrt.f32 %v254_v9 }
 0x144   : > { %v403_v10 = vpop.eup %402 }
 0x145   : > { %v256_v12 = vmul.f32 %v403_v10, %v248_v4 }
 0x147   : > { %v264_v14 = vmul.f32 %v374_v11, %v256_v12 }
 0x149   : > { %v272_v16 = vadd.f32 %v375_v13, %v264_v14 }
 0x14b   : > { %v274_v17 = vadd.f32 %v273_v15, %v272_v16 }
 0x14d   : > { %275 = vst.msk [vmem:[%s240_s5] sm:$0xff] %vm242_vm0, %v274_v17 }
 0x14e PF: > { %s14_s17 = sadd.s32 1, %s426_s17   ;;  %s503_s15 = smov %s422_s16 }
 0x14f   : > { %p11_p5 = scmp.ge.s32.totalorder %s14_s17, 4   ;;  %s504_s16 = smov %s506_s18 }
 0x151   :  { %13 = sbr.rel (!%p11_p5) target bundleno = 2 (0x2), region = 69 }

// kernel: action_recognition_forward.13
= control target key start
LH: loop header
LB: loop body
LE: loop exit
PB: predicated region body
PF: predicated region fallthrough
CT: control target
= control target key end

     0   :  { %s1013_s12 = smov 0   ;;  %s1015_s13 = smov 0   ;;  %s1134_s0 = inlined_call_operand.vmem [shape: f32[16,1024], index: 0, kind: input, shape index: {}]   ;;  %s1135_s1 = inlined_call_operand.vmem [shape: bf16[1024,32], index: 1, kind: input, shape index: {}]   ;;  %s1136_s2 = inlined_call_operand.vmem [shape: f32[1,32], index: 2, kind: input, shape index: {}]   ;;  %s1137_s3 = inlined_call_operand.vmem [shape: f32[16,32], index: 3, kind: output, shape index: {}]  }
   0x1   :  { %s1017_s14 = smov 0   ;;  %s1019_s15 = smov 0  }
   0x2   :  { %s1021_s16 = smov 0  }
   0x3 LB: > { %s25_s17 = sadd.s32 1, %s987_s15  ;;  %p48_p1 = scmp.ne.s32.totalorder %s979_s13, %s975_s12  ;;  %s991_s16 = sphi %s1021_s16, %s13_s16   ;;  %s987_s15 = sphi %s1019_s15, %s1141_s15   ;;  %s983_s14 = sphi %s1017_s14, %s1140_s14   ;;  %s979_s13 = sphi %s1015_s13, %s1139_s13   ;;  %s975_s12 = sphi %s1013_s12, %s1138_s12  }
   0x4   : > { %p26_p0 = scmp.ge.s32.totalorder %s25_s17, 2  ;;  %p49_p2 = scmp.eq.s32.totalorder %s991_s16, 0 }
   0x5   : > { %s41_s19 = sadd.s32 1, %s979_s13  ;;  %p788_p5 = scmp.ge.s32.totalorder %s991_s16, 2 }
   0x6   : > { %s1143_s17 = smov (%p26_p0, %s25_s17), 0  ;;  %p50_p3 = por %p49_p2, %p48_p1 }
   0x7   : > { %s37_s18 = ssub.s32 %s987_s15, %s1143_s17  ;;  %162 = sbr.rel (%p788_p5) target bundleno = 22 (0x16), region = 20 }
   0x8   : > { %p39_p4 = scmp.eq.s32.totalorder %s37_s18, 0 }
   0xa   : > { %s1048_s20 = scalar_select %p39_p4, %s979_s13, %s41_s19  }
   0xe   : > { %165 = sbr.rel (!%p50_p3) target bundleno = 22 (0x16), region = 24  ;;  %s167_s21 = sand.u32 (%p50_p3), 1, %s979_s13  }
   0xf   : > { %s836_s22 = sshll.u32 (%p50_p3), %s987_s15, 5  ;;  %s789_s23 = sshll.u32 (%p50_p3), %s167_s21, 6 }
  0x10   : > { %s175_s26 = scalar_lea.vmem (%p50_p3), %s1134_s0, %s836_s22  ;;  %s169_s27 = scalar_lea.vmem (%p50_p3), [#allocation3], %s789_s23 }
  0x11   : > { %v188_v0 = vld [vmem:[%s175_s26] sm:$0xff] (%p50_p3)  ;;  %v190_v1 = vld [vmem:[%s175_s26 + $0x8] sm:$0xff] (%p50_p3)  ;;  %v192_v2 = vld [vmem:[%s175_s26 + $0x10] sm:$0xff] (%p50_p3) }
  0x12   : > { %189 = vst [vmem:[%s169_s27] sm:$0xff] (%p50_p3), %v188_v0  ;;  %191 = vst [vmem:[%s169_s27 + $0x8] sm:$0xff] (%p50_p3), %v190_v1  ;;  %v194_v3 = vld [vmem:[%s175_s26 + $0x18] sm:$0xff] (%p50_p3)  ;;  %v196_v4 = vld [vmem:[%s175_s26 + $0x40] sm:$0xff] (%p50_p3) }
  0x13   : > { %193 = vst [vmem:[%s169_s27 + $0x10] sm:$0xff] (%p50_p3), %v192_v2  ;;  %v198_v5 = vld [vmem:[%s175_s26 + $0x48] sm:$0xff] (%p50_p3)  ;;  %195 = vst [vmem:[%s169_s27 + $0x18] sm:$0xff] (%p50_p3), %v194_v3  ;;  %v200_v6 = vld [vmem:[%s175_s26 + $0x50] sm:$0xff] (%p50_p3) }
  0x14   : > { %197 = vst [vmem:[%s169_s27 + $0x20] sm:$0xff] (%p50_p3), %v196_v4  ;;  %199 = vst [vmem:[%s169_s27 + $0x28] sm:$0xff] (%p50_p3), %v198_v5  ;;  %v202_v7 = vld [vmem:[%s175_s26 + $0x58] sm:$0xff] (%p50_p3) }
  0x15   : > { %201 = vst [vmem:[%s169_s27 + $0x30] sm:$0xff] %v200_v6  ;;  %203 = vst [vmem:[%s169_s27 + $0x38] sm:$0xff] %v202_v7 }
  0x16 PF: > { %p792_p6 = scmp.ge.s32.totalorder %s991_s16, 1  ;;  %p220_p7 = scmp.lt.s32.totalorder %s991_s16, 3 }
  0x18   : > { %p221_p8 = pnand %p792_p6, %p220_p7 }
  0x19   : > { %s794_s28 = sshll.u32 (!%p221_p8), %s983_s14, 6  ;;  %s227_s29 = sand.u32 (!%p221_p8), 1, %s975_s12  }
  0x1a   : > { %224 = sbr.rel (%p221_p8) target bundleno = 311 (0x137), region = 51  ;;  %p267_p9 = scmp.lt.s32.totalorder (!%p221_p8), %s794_s28, 127 }
  0x1b   : > { %s793_s30 = sshll.u32 (!%p221_p8), %s227_s29, 6  ;;  %p828_p10 = scmp.ne.s32.totalorder (!%p221_p8), %s983_s14, 0 }
  0x1c   : > { %s1060_s4 = scalar_lea.vmem (!%p221_p8), [#allocation3], %s793_s30 }
  0x1d   : > { %v289_v8 = vld [vmem:[%s1060_s4 + $0x8] sm:$0xff] (!%p221_p8)  ;;  %v291_v10 = vld [vmem:[%s1060_s4 + $0x18] sm:$0xff] (!%p221_p8)  ;;  %v288_v41 = vld [vmem:[%s1060_s4] sm:$0xff] (!%p221_p8) }
  0x1e   : > { %v293_v9 = vld [vmem:[%s1060_s4 + $0x28] sm:$0xff] (!%p221_p8)  ;;  %v295_v12 = vld [vmem:[%s1060_s4 + $0x38] sm:$0xff] (!%p221_p8)  ;;  %v292_v42 = vld [vmem:[%s1060_s4 + $0x20] sm:$0xff] (!%p221_p8) }
  0x1f   : > { %v297_v11 = vpack.c.bf16 (!%p221_p8), %v293_v9, %v289_v8  ;;  %v299_v13 = vpack.c.bf16 (!%p221_p8), %v295_v12, %v291_v10  ;;  %v290_v44 = vld [vmem:[%s1060_s4 + $0x10] sm:$0xff] (!%p221_p8)  ;;  %v296_v50 = vpack.c.bf16 (!%p221_p8), %v292_v42, %v288_v41 }
  0x20   : > { %v294_v45 = vld [vmem:[%s1060_s4 + $0x30] sm:$0xff] (!%p221_p8) }
  0x21   : > { %s1145_s28 = smov (!%p267_p9, %s794_s28), 127  ;;  %588 = vmatprep.mubr.bf16.mxu0 %v297_v11  ;;  %629 = vmatprep.mubr.bf16.mxu1 %v299_v13  ;;  %v298_v51 = vpack.c.bf16 %v294_v45, %v290_v44  ;;  %vm642_vm0 = vcmask (!%p828_p10), 261120  }
  0x22   : > { %s795_s5 = sshll.u32 %s1145_s28, 2 }
  0x23   : > { %s1069_s8 = scalar_lea.vmem %s1135_s1, %s795_s5 }
  0x24   : > { %v921_v14 = vld [vmem:[%s1069_s8 + $0x40] sm:$0xff]   ;;  %v925_v18 = vld [vmem:[%s1069_s8 + $0x48] sm:$0xff]   ;;  %v929_v22 = vld [vmem:[%s1069_s8 + $0x50] sm:$0xff]  }
  0x25   : > { %v922_v15 = vld [vmem:[%s1069_s8 + $0xc0] sm:$0xff]   ;;  %837 = vmatprep.subr.bf16.mxu0 %v921_v14  ;;  %v926_v19 = vld [vmem:[%s1069_s8 + $0xc8] sm:$0xff]   ;;  %v930_v23 = vld [vmem:[%s1069_s8 + $0xd0] sm:$0xff]  }
  0x26   : > { %v923_v16 = vld [vmem:[%s1069_s8] sm:$0xff]   ;;  %859 = vmatprep.subr.bf16.mxu1 %v922_v15  ;;  %v927_v20 = vld [vmem:[%s1069_s8 + $0x8] sm:$0xff]   ;;  %v931_v24 = vld [vmem:[%s1069_s8 + $0x10] sm:$0xff]  }
  0x27   : > { %v924_v17 = vld [vmem:[%s1069_s8 + $0x80] sm:$0xff]   ;;  %838 = vmatpush3.bf16.msra.mxu0 %v923_v16  ;;  %v928_v21 = vld [vmem:[%s1069_s8 + $0x88] sm:$0xff]   ;;  %v932_v25 = vld [vmem:[%s1069_s8 + $0x90] sm:$0xff]  }
  0x28   : > { %860 = vmatpush3.bf16.msra.mxu1 %v924_v17  ;;  %839 = vmatprep.subr.bf16.mxu0 %v925_v18  ;;  %v933_v26 = vld [vmem:[%s1069_s8 + $0x58] sm:$0xff]   ;;  %v937_v30 = vld [vmem:[%s1069_s8 + $0x60] sm:$0xff]   ;;  %v941_v34 = vld [vmem:[%s1069_s8 + $0x68] sm:$0xff]  }
  0x29   : > { %861 = vmatprep.subr.bf16.mxu1 %v926_v19  ;;  %v934_v27 = vld [vmem:[%s1069_s8 + $0xd8] sm:$0xff]   ;;  %v938_v31 = vld [vmem:[%s1069_s8 + $0xe0] sm:$0xff]   ;;  %v942_v35 = vld [vmem:[%s1069_s8 + $0xe8] sm:$0xff]  }
  0x2a   : > { %v935_v28 = vld [vmem:[%s1069_s8 + $0x18] sm:$0xff]   ;;  %v939_v32 = vld [vmem:[%s1069_s8 + $0x20] sm:$0xff]   ;;  %v943_v36 = vld [vmem:[%s1069_s8 + $0x28] sm:$0xff]  }
  0x2b   : > { %840 = vmatpush3.bf16.msra.mxu0 %v927_v20  ;;  %v936_v29 = vld [vmem:[%s1069_s8 + $0x98] sm:$0xff]   ;;  %v940_v33 = vld [vmem:[%s1069_s8 + $0xa0] sm:$0xff]   ;;  %v944_v37 = vld [vmem:[%s1069_s8 + $0xa8] sm:$0xff]  }
  0x2c   : > { %862 = vmatpush3.bf16.msra.mxu1 %v928_v21  ;;  %841 = vmatprep.subr.bf16.mxu0 %v929_v22  ;;  %v945_v38 = vld [vmem:[%s1069_s8 + $0x70] sm:$0xff]   ;;  %v949_v46 = vld [vmem:[%s1069_s8 + $0x78] sm:$0xff]  }
  0x2d   : > { %863 = vmatprep.subr.bf16.mxu1 %v930_v23  ;;  %v946_v39 = vld [vmem:[%s1069_s8 + $0xf0] sm:$0xff]   ;;  %v950_v47 = vld [vmem:[%s1069_s8 + $0xf8] sm:$0xff]  }
  0x2e   : > { %v947_v40 = vld [vmem:[%s1069_s8 + $0x30] sm:$0xff]   ;;  %v951_v48 = vld [vmem:[%s1069_s8 + $0x38] sm:$0xff]  }
  0x2f   : > { %842 = vmatpush3.bf16.msra.mxu0 %v931_v24  ;;  %v948_v43 = vld [vmem:[%s1069_s8 + $0xb0] sm:$0xff]   ;;  %v952_v49 = vld [vmem:[%s1069_s8 + $0xb8] sm:$0xff]  }
  0x30   : > { %864 = vmatpush3.bf16.msra.mxu1 %v932_v25  ;;  %843 = vmatprep.subr.bf16.mxu0 %v933_v26 }
  0x31   : > { %865 = vmatprep.subr.bf16.mxu1 %v934_v27 }
  0x33   : > { %844 = vmatpush3.bf16.msra.mxu0 %v935_v28 }
  0x34   : > { %866 = vmatpush3.bf16.msra.mxu1 %v936_v29  ;;  %845 = vmatprep.subr.bf16.mxu0 %v937_v30 }
  0x35   : > { %867 = vmatprep.subr.bf16.mxu1 %v938_v31 }
  0x37   : > { %846 = vmatpush3.bf16.msra.mxu0 %v939_v32 }
  0x38   : > { %868 = vmatpush3.bf16.msra.mxu1 %v940_v33  ;;  %847 = vmatprep.subr.bf16.mxu0 %v941_v34 }
  0x39   : > { %869 = vmatprep.subr.bf16.mxu1 %v942_v35 }
  0x3b   : > { %848 = vmatpush3.bf16.msra.mxu0 %v943_v36 }
  0x3c   : > { %870 = vmatpush3.bf16.msra.mxu1 %v944_v37  ;;  %849 = vmatprep.subr.bf16.mxu0 %v945_v38 }
  0x3d   : > { %871 = vmatprep.subr.bf16.mxu1 %v946_v39 }
  0x3f   : > { %850 = vmatpush3.bf16.msra.mxu0 %v947_v40 }
  0x40   : > { %872 = vmatpush3.bf16.msra.mxu1 %v948_v43  ;;  %851 = vmatprep.subr.bf16.mxu0 %v949_v46 }
  0x41   : > { %873 = vmatprep.subr.bf16.mxu1 %v950_v47 }
  0x43   : > { %852 = vmatpush3.bf16.msra.mxu0 %v951_v48 }
  0x44   : > { %874 = vmatpush3.bf16.msra.mxu1 %v952_v49 }
  0x46   : > { %589 = vmatmul.mubr.bf16.vlgmr.msra.gmra.mrb[0].mxu0 %v296_v50 }
  0x47   : > { %630 = vmatmul.mubr.bf16.vlgmr.msra.gmra.mrb[0].mxu1 %v298_v51 }
 0x119   : > { %v853_v52 = vpop.f32.mrb[0].mxu0 }
 0x11a   : > { %v875_v53 = vpop.f32.mrb[0].mxu1  ;;  %v854_v54 = vpop.f32.mrb[1].mxu0  ;;  %641 = sbr.rel (%p828_p10) target bundleno = 291 (0x123), region = 59 }
 0x11b   : > { %v855_v55 = vadd.f32 %v854_v54, %v853_v52  ;;  %v876_v56 = vpop.f32.mrb[1].mxu1  ;;  %v856_v57 = vpop.f32.mrb[2].mxu0 }
 0x11c   : > { %v877_v58 = vadd.f32 %v876_v56, %v875_v53  ;;  %v878_v59 = vpop.f32.mrb[2].mxu1  ;;  %v857_v60 = vpop.f32.mrb[3].mxu0 }
 0x11d   : > { %v858_v61 = vadd.f32 %v857_v60, %v856_v57  ;;  %v879_v62 = vpop.f32.mrb[3].mxu1 }
 0x11e   : > { %v632_v63 = vadd.f32 %v877_v58, %v855_v55  ;;  %v880_v0 = vadd.f32 %v879_v62, %v878_v59 }
 0x120   : > { %v635_v1 = vadd.f32 %v880_v0, %v858_v61  ;;  %643 = vst.msk [vmem:[#allocation2] sm:$0xff] (!%p828_p10), %vm642_vm0, %v632_v63 }
 0x122   : > { %644 = vst.msk [vmem:[#allocation2 + $0x8] sm:$0xff] %vm642_vm0, %v635_v1 }
 0x123 PF: > { %p829_p11 = scmp.le.s32.totalorder %s983_s14, 0 }
 0x124   : > { %vm653_vm1 = vcmask (!%p829_p11), 261120  }
 0x125   : > { %648 = sbr.rel (%p829_p11) target bundleno = 301 (0x12d), region = 63 }
 0x129   : > { %v649_v2 = vld [vmem:[#allocation2] sm:$0xff] (!%p829_p11)  ;;  %v650_v3 = vld [vmem:[#allocation2 + $0x8] sm:$0xff] (!%p829_p11) }
 0x12a   : > { %v651_v4 = vadd.f32 (!%p829_p11), %v649_v2, %v632_v63  ;;  %v652_v5 = vadd.f32 (!%p829_p11), %v650_v3, %v635_v1 }
 0x12c   : > { %654 = vst.msk [vmem:[#allocation2] sm:$0xff] %vm653_vm1, %v651_v4  ;;  %655 = vst.msk [vmem:[#allocation2 + $0x8] sm:$0xff] %vm653_vm1, %v652_v5 }
 0x12d PF: > { %p830_p12 = scmp.ne.s32.totalorder %s983_s14, 1 }
 0x12e   : > { %v831_v7 = vld [vmem:[%s1136_s2] ss:$0 sm:$0xff] (!%p830_p12)  ;;  %vm671_vm2 = vcmask (!%p830_p12), 261120  }
 0x12f   : > { %659 = sbr.rel (%p830_p12) target bundleno = 311 (0x137), region = 67 }
 0x133   : > { %v660_v6 = vld [vmem:[#allocation2] sm:$0xff] (!%p830_p12)  ;;  %v661_v8 = vld [vmem:[#allocation2 + $0x8] sm:$0xff] (!%p830_p12) }
 0x134   : > { %v669_v9 = vadd.f32 (!%p830_p12), %v831_v7, %v660_v6  ;;  %v670_v10 = vadd.f32 (!%p830_p12), %v831_v7, %v661_v8 }
 0x136   : > { %672 = vst.msk [vmem:[%s1137_s3] sm:$0xff] %vm671_vm2, %v669_v9  ;;  %673 = vst.msk [vmem:[%s1137_s3 + $0x8] sm:$0xff] %vm671_vm2, %v670_v10 }
 0x137 PF: > { %s13_s16 = sadd.s32 1, %s991_s16   ;;  %s1138_s12 = smov %s979_s13 }
 0x138   : > { %p10_p13 = scmp.ge.s32.totalorder %s13_s16, 4   ;;  %s1139_s13 = smov %s1048_s20 }
 0x139   : > { %s1140_s14 = smov %s987_s15  ;;  %s1141_s15 = smov %s1143_s17 }
 0x13a   :  { %12 = sbr.rel (!%p10_p13) target bundleno = 3 (0x3), region = 108 }

// kernel: action_recognition_forward.19
= control target key start
LH: loop header
LB: loop body
LE: loop exit
PB: predicated region body
PF: predicated region fallthrough
CT: control target
= control target key end

     0   :  { %v151_v0 = vmov 0.0   ;;  %vm152_vm0 = vmmov 0   ;;  %vm64_vm1 = vcmask 523264   ;;  %vm113_vm2 = vcmask 261120   ;;  %s208_s1 = inlined_call_operand.vmem [shape: bf16[64,32], index: 1, kind: input, shape index: {}]   ;;  %s209_s0 = inlined_call_operand.vmem [shape: bf16[16,64], index: 0, kind: input, shape index: {}]   ;;  %s210_s2 = inlined_call_operand.vmem [shape: f32[1,32], index: 2, kind: input, shape index: {}]   ;;  %s211_s3 = inlined_call_operand.vmem [shape: f32[16,32], index: 3, kind: input, shape index: {}]   ;;  %s212_s4 = inlined_call_operand.vmem [shape: f32[16,32], index: 4, kind: output, shape index: {}]  }
   0x1   :  { %132 = vmatprep.subr.bf16.mxu0 %v151_v0  ;;  %v146_v1 = vld [vmem:[%s208_s1] sm:$0xff]   ;;  %140 = vmatprep.mubr.msk.bf16.mxu0 %vm152_vm0, %v151_v0  ;;  %v147_v2 = vld [vmem:[%s208_s1 + $0x8] sm:$0xff]   ;;  %v148_v3 = vld [vmem:[%s208_s1 + $0x10] sm:$0xff]  }
   0x2   :  { %133 = vmatpush3.bf16.msra.mxu0 %v146_v1  ;;  %v149_v4 = vld [vmem:[%s208_s1 + $0x18] sm:$0xff]   ;;  %v150_v5 = vld [vmem:[%s209_s0] sm:$0xff]   ;;  %v110_v12 = vld [vmem:[%s211_s3 + $0x8] sm:$0xff] }
   0x3   :  { %134 = vmatprep.subr.bf16.mxu0 %v151_v0  ;;  %v120_v6 = vld [vmem:[%s210_s2] ss:$0 sm:$0xff] }
   0x4   :  { %v109_v8 = vld [vmem:[%s211_s3] sm:$0xff] }
   0x6   :  { %135 = vmatpush3.bf16.msra.mxu0 %v147_v2 }
   0x7   :  { %136 = vmatprep.subr.bf16.mxu0 %v151_v0 }
   0xa   :  { %137 = vmatpush3.bf16.msra.mxu0 %v148_v3 }
   0xb   :  { %138 = vmatprep.subr.bf16.mxu0 %v151_v0 }
   0xe   :  { %139 = vmatpush3.bf16.msra.mxu0 %v149_v4 }
  0x11   :  { %141 = vmatmul.mubr.msk.bf16.vlgmr.msra.gmra.mrb[0].mxu0 %vm64_vm1, %v150_v5 }
  0xe4   :  { %v102_v7 = vpop.f32.mrb[0].mxu0 }
  0xe5   :  { %v103_v9 = vadd.f32 %v120_v6, %v102_v7  ;;  %v142_v10 = vpop.f32.mrb[1].mxu0 }
  0xe6   :  { %v105_v11 = vpop.f32.mrb[2].mxu0 }
  0xe7   :  { %v111_v13 = vadd.f32 %v109_v8, %v103_v9  ;;  %v106_v14 = vadd.f32 %v120_v6, %v105_v11  ;;  %v143_v15 = vpop.f32.mrb[3].mxu0 }
  0xe9   :  { %114 = vst.msk [vmem:[%s212_s4] sm:$0xff] %vm113_vm2, %v111_v13  ;;  %v112_v16 = vadd.f32 %v110_v12, %v106_v14 }
  0xeb   :  { %115 = vst.msk [vmem:[%s212_s4 + $0x8] sm:$0xff] %vm113_vm2, %v112_v16 }

// kernel: action_recognition_forward.17
= control target key start
LH: loop header
LB: loop body
LE: loop exit
PB: predicated region body
PF: predicated region fallthrough
CT: control target
= control target key end

     0   :  { %v138_v0 = vmov 0.0   ;;  %vm139_vm0 = vmmov 0   ;;  %vm56_vm1 = vcmask 523264   ;;  %vm101_vm2 = vcmask 261120   ;;  %s187_s1 = inlined_call_operand.vmem [shape: bf16[64,32], index: 1, kind: input, shape index: {}]   ;;  %s188_s0 = inlined_call_operand.vmem [shape: bf16[16,64], index: 0, kind: input, shape index: {}]   ;;  %s189_s2 = inlined_call_operand.vmem [shape: f32[16,32], index: 2, kind: input, shape index: {}]   ;;  %s190_s3 = inlined_call_operand.vmem [shape: f32[16,32], index: 3, kind: output, shape index: {}]  }
   0x1   :  { %119 = vmatprep.subr.bf16.mxu0 %v138_v0  ;;  %v133_v1 = vld [vmem:[%s187_s1] sm:$0xff]   ;;  %127 = vmatprep.mubr.msk.bf16.mxu0 %vm139_vm0, %v138_v0  ;;  %v134_v2 = vld [vmem:[%s187_s1 + $0x8] sm:$0xff]   ;;  %v135_v3 = vld [vmem:[%s187_s1 + $0x10] sm:$0xff]  }
   0x2   :  { %120 = vmatpush3.bf16.msra.mxu0 %v133_v1  ;;  %v136_v4 = vld [vmem:[%s187_s1 + $0x18] sm:$0xff]   ;;  %v137_v5 = vld [vmem:[%s188_s0] sm:$0xff]   ;;  %v26_v8 = vld [vmem:[%s189_s2 + $0x8] sm:$0xff] }
   0x3   :  { %121 = vmatprep.subr.bf16.mxu0 %v138_v0  ;;  %v25_v6 = vld [vmem:[%s189_s2] sm:$0xff] }
   0x6   :  { %122 = vmatpush3.bf16.msra.mxu0 %v134_v2 }
   0x7   :  { %123 = vmatprep.subr.bf16.mxu0 %v138_v0 }
   0xa   :  { %124 = vmatpush3.bf16.msra.mxu0 %v135_v3 }
   0xb   :  { %125 = vmatprep.subr.bf16.mxu0 %v138_v0 }
   0xe   :  { %126 = vmatpush3.bf16.msra.mxu0 %v136_v4 }
  0x11   :  { %128 = vmatmul.mubr.msk.bf16.vlgmr.msra.gmra.mrb[0].mxu0 %vm56_vm1, %v137_v5 }
  0xe4   :  { %v94_v7 = vpop.f32.mrb[0].mxu0 }
  0xe5   :  { %v95_v9 = vadd.f32 %v94_v7, %v25_v6  ;;  %v129_v10 = vpop.f32.mrb[1].mxu0 }
  0xe6   :  { %v97_v11 = vpop.f32.mrb[2].mxu0 }
  0xe7   :  { %102 = vst.msk [vmem:[%s190_s3] sm:$0xff] %vm101_vm2, %v95_v9  ;;  %v98_v12 = vadd.f32 %v97_v11, %v26_v8  ;;  %v130_v13 = vpop.f32.mrb[3].mxu0 }
  0xe9   :  { %103 = vst.msk [vmem:[%s190_s3 + $0x8] sm:$0xff] %vm101_vm2, %v98_v12 }

// kernel: action_recognition_forward.16
= control target key start
LH: loop header
LB: loop body
LE: loop exit
PB: predicated region body
PF: predicated region fallthrough
CT: control target
= control target key end

     0   :  { %s830_s6 = smov 0   ;;  %s927_s0 = inlined_call_operand.vmem [shape: bf16[2,8,192], index: 0, kind: input, shape index: {}]   ;;  %s928_s1 = inlined_call_operand.vmem [shape: bf16[2,8,64], index: 1, kind: output, shape index: {}]  }
   0x1 LB: > { %s667_s7 = sadd.s32 4294967295, %s809_s6   ;;  %p671_p0 = scmp.ge.s32.totalorder %s809_s6, 1  ;;  %s809_s6 = sphi %s830_s6, %s11_s6  }
   0x2   : > { %p87_p1 = scmp.lt.s32.totalorder %s809_s6, 3 }
   0x4   : > { %p88_p2 = pnand %p671_p0, %p87_p1 }
   0x5   : > { %p106_p3 = scmp.lt.s32.totalorder (!%p88_p2), %s667_s7, 1  ;;  %v811_v0 = vmov (!%p88_p2), 0.0   ;;  %vm812_vm0 = vmmov (!%p88_p2), 0   ;;  %s813_s12 = smov (!%p88_p2), 64   ;;  %vm123_vm1 = vcmask (!%p88_p2), 130048   ;;  %vm170_vm2 = vcmask (!%p88_p2), 64512  }
   0x6   : > { %91 = sbr.rel (%p88_p2) target bundleno = 1552 (0x610), region = 24  ;;  %715 = vmatprep.subr.bf16.mxu0 (!%p88_p2), %v811_v0  ;;  %717 = vmatprep.mubr.msk.bf16.mxu0 (!%p88_p2), %vm812_vm0, %v811_v0  ;;  %s814_s13 = smov (!%p88_p2), 48   ;;  %vm186_vm3 = vcmask (!%p88_p2), 1043456   ;;  %vm231_vm4 = vcmask (!%p88_p2), 125952   ;;  %vm358_vm5 = vcmask (!%p88_p2), 257152   ;;  %vm485_vm6 = vcmask (!%p88_p2), 388352  }
   0x7   : > { %721 = vmatprep.subr.bf16.mxu1 (!%p88_p2), %v811_v0  ;;  %723 = vmatprep.mubr.msk.bf16.mxu1 (!%p88_p2), %vm812_vm0, %v811_v0  ;;  %s815_s14 = smov (!%p88_p2), 80   ;;  %s816_s15 = smov (!%p88_p2), 112   ;;  %vm612_vm7 = vcmask (!%p88_p2), 519552  }
   0x8   : > { %s817_s16 = smov (!%p88_p2), 32   ;;  %s818_s17 = smov (!%p88_p2), 96  }
   0x9   : > { %s819_s18 = smov (!%p88_p2), 16  }
   0xd   : > { %s930_s7 = smov (!%p106_p3, %s667_s7), 1 }
   0xe   : > { %s695_s8 = sshll.u32 %s930_s7, 3  ;;  %s674_s19 = sshll.u32 %s930_s7, 2 }
   0xf   : > { %s850_s11 = scalar_lea.vmem %s927_s0, %s695_s8  ;;  %s891_s22 = scalar_lea.vmem %s928_s1, %s674_s19 }
  0x10   : > { %v116_v1 = vld [vmem:[%s850_s11] sm:$0xf]  ;;  %v117_v17 = vld [vmem:[%s850_s11 + $0x4] sm:$0xf] }
  0x11   : > { %v675_v2 = vcombine.low %v116_v1, %v116_v1  ;;  %v781_v5 = vld [vmem:[%s850_s11] ss:$0 sps:$4 sm:$0xff]   ;;  %v188_v18 = vsel %vm186_vm3, %v117_v17, 0  ;;  %v784_v53 = vld [vmem:[%s850_s11 + $0x4] ss:$0 sps:$4 sm:$0xff]  }
  0x12   : > { %240 = vrot.lane.b32.xlu1 %v781_v5, %s814_s13  ;;  %v783_v11 = vld [vmem:[%s850_s11] ss:$0 sps:$4 sm:$0xff]   ;;  %722 = vmatpush3.bf16.msra.mxu1 %v188_v18  ;;  %v785_v54 = vld [vmem:[%s850_s11 + $0x4] ss:$0 sps:$4 sm:$0xff]  }
  0x13   : > { %121 = vrot.lane.b32.xlu0 %v675_v2, %s813_s12  ;;  %v782_v19 = vld [vmem:[%s850_s11] ss:$0 sps:$4 sm:$0xff]   ;;  %727 = vmatprep.subr.bf16.mxu1 %v811_v0 }
  0x84   : > { %v241_v20 = vpop.permute.xlu1 %240 }
  0x85   : > { %v122_v3 = vpop.permute.xlu0 %121  ;;  %v246_v27 = vsel %vm123_vm1, %v241_v20, 0 }
  0x86   : > { %v128_v4 = vsel %vm123_vm1, %v122_v3, 0 }
  0x87   : > { %716 = vmatpush3.bf16.xpose.msra.mxu0 %v128_v4 }
  0x88   : > { %733 = vmatprep.subr.bf16.mxu0 %v811_v0 }
  0x8e   : > { %718 = vmatmul.mubr.msk.bf16.vlgmr.msra.gmra.mrb[0].mxu0 %vm123_vm1, %v116_v1 }
  0x8f   : > { %735 = vmatprep.mubr.msk.bf16.mxu0 %vm812_vm0, %v811_v0 }
 0x161   : > { %v164_v6 = vpop.f32.mrb[0].mxu0 }
 0x162   : > { %v719_v7 = vpop.f32.mrb[1].mxu0  ;;  %v171_v8 = vsel %vm170_vm2, %v164_v6, -inf }
 0x163   : > { %172 = vmax.xlane.f32.xlu0 %v171_v8  ;;  %v167_v9 = vpop.f32.mrb[2].mxu0 }
 0x164   : > { %v720_v10 = vpop.f32.mrb[3].mxu0  ;;  %v786_v9 = vld [vmem:[%s850_s11 + $0x4] ss:$0 sps:$4 sm:$0xff]  }
 0x179   : > { %492 = vrot.lane.b32.xlu0 %v783_v11, %s815_s14 }
 0x1f0   : > { %v173_v12 = vpop.xlane.xlu0 %172 }
 0x1f1   : > { %v174_v13 = vsub.f32 %v164_v6, %v173_v12 }
 0x1f3   : > { %v175_v14 = vmul.f32 1.442695, %v174_v13 }
 0x1f4   : > { %v493_v32 = vpop.permute.xlu0 %492 }
 0x1f5   : > { %787 = vpow2.f32 %v175_v14 }
 0x1ff   : > { %v788_v15 = vpop.eup %787 }
 0x200   : > { %v177_v16 = vsel %vm170_vm2, %v788_v15, 0.0 }
 0x201   : > { %178 = vadd.xlane.f32.xlu1 %v177_v16 }
 0x212   : > { %238 = vrot.lane.b32.xlu1 %v781_v5, %s816_s15 }
 0x216   : > { %367 = vrot.lane.b32.xlu1 %v782_v19, %s817_s16 }
 0x21a   : > { %365 = vrot.lane.b32.xlu1 %v782_v19, %s818_s17 }
 0x21e   : > { %494 = vrot.lane.b32.xlu1 %v783_v11, %s819_s18 }
 0x28e   : > { %v179_v21 = vpop.xlane.xlu1 %178 }
 0x28f   : > { %789 = vrcp.f32 %v179_v21 }
 0x292   : > { %v239_v22 = vpop.permute.xlu1 %238 }
 0x296   : > { %v368_v26 = vpop.permute.xlu1 %367 }
 0x297   : > { %v373_v29 = vsel %vm123_vm1, %v368_v26, 0 }
 0x299   : > { %v790_v23 = vpop.eup %789 }
 0x29a   : > { %v181_v24 = vmul.f32 %v790_v23, %v788_v15  ;;  %v366_v28 = vpop.permute.xlu1 %365 }
 0x29c   : > { %v182_v25 = vpack.c.bf16 %v181_v24, %v181_v24 }
 0x29e   : > { %724 = vmatmul.mubr.msk.bf16.vlgmr.msra.gmra.mrb[0].mxu1 %vm170_vm2, %v182_v25  ;;  %v495_v30 = vpop.permute.xlu1 %494 }
 0x29f   : > { %728 = vmatpush3.bf16.xpose.msra.mxu1 %v246_v27  ;;  %729 = vmatprep.mubr.msk.bf16.mxu1 %vm812_vm0, %v811_v0  ;;  %v500_v31 = vsel %vm123_vm1, %v495_v30, 0 }
 0x2a0   : > { %739 = vmatprep.subr.bf16.mxu1 %v811_v0 }
 0x2a6   : > { %730 = vmatmul.mubr.msk.bf16.vlgmr.msra.gmra.mrb[4].mxu1 %vm123_vm1, %v239_v22 }
 0x2a7   : > { %740 = vmatpush3.bf16.xpose.msra.mxu1 %v373_v29  ;;  %741 = vmatprep.mubr.msk.bf16.mxu1 %vm812_vm0, %v811_v0 }
 0x2a8   : > { %751 = vmatprep.subr.bf16.mxu1 %v811_v0 }
 0x2ae   : > { %742 = vmatmul.mubr.msk.bf16.vlgmr.msra.gmra.mrb[8].mxu1 %vm123_vm1, %v366_v28 }
 0x2af   : > { %752 = vmatpush3.bf16.xpose.msra.mxu1 %v500_v31  ;;  %753 = vmatprep.mubr.msk.bf16.mxu1 %vm812_vm0, %v811_v0 }
 0x2b6   : > { %754 = vmatmul.mubr.msk.bf16.vlgmr.msra.gmra.mrb[12].mxu1 %vm123_vm1, %v493_v32 }
 0x371   : > { %v224_v33 = vpop.f32.mrb[0].mxu1 }
 0x372   : > { %v230_v34 = vpack.c.bf16 %v224_v33, %v224_v33  ;;  %v725_v35 = vpop.f32.mrb[1].mxu1 }
 0x373   : > { %v227_v36 = vpop.f32.mrb[2].mxu1 }
 0x374   : > { %232 = vst.msk [vmem:[%s891_s22] sm:$0xf] %vm231_vm4, %v230_v34  ;;  %v726_v37 = vpop.f32.mrb[3].mxu1 }
 0x379   : > { %v282_v38 = vpop.f32.mrb[4].mxu1 }
 0x37a   : > { %v731_v39 = vpop.f32.mrb[5].mxu1  ;;  %v288_v40 = vsel %vm170_vm2, %v282_v38, -inf }
 0x37b   : > { %289 = vmax.xlane.f32.xlu1 %v288_v40  ;;  %v285_v41 = vpop.f32.mrb[6].mxu1 }
 0x37c   : > { %v732_v42 = vpop.f32.mrb[7].mxu1 }
 0x381   : > { %v409_v43 = vpop.f32.mrb[8].mxu1 }
 0x382   : > { %v743_v44 = vpop.f32.mrb[9].mxu1  ;;  %v415_v45 = vsel %vm170_vm2, %v409_v43, -inf }
 0x383   : > { %416 = vmax.xlane.f32.xlu0 %v415_v45  ;;  %v412_v46 = vpop.f32.mrb[10].mxu1 }
 0x384   : > { %v744_v47 = vpop.f32.mrb[11].mxu1 }
 0x389   : > { %v536_v48 = vpop.f32.mrb[12].mxu1 }
 0x38a   : > { %v755_v49 = vpop.f32.mrb[13].mxu1  ;;  %v542_v50 = vsel %vm170_vm2, %v536_v48, -inf }
 0x38b   : > { %543 = vmax.xlane.f32.xlu1 %v542_v50  ;;  %v539_v51 = vpop.f32.mrb[14].mxu1 }
 0x38c   : > { %v756_v52 = vpop.f32.mrb[15].mxu1 }
 0x399   : > { %303 = vrot.lane.b32.xlu0 %v785_v54, %s816_s15 }
 0x39c   : > { %430 = vrot.lane.b32.xlu1 %v784_v53, %s818_s17 }
 0x408   : > { %v290_v55 = vpop.xlane.xlu1 %289 }
 0x409   : > { %v291_v56 = vsub.f32 %v282_v38, %v290_v55 }
 0x40b   : > { %v292_v57 = vmul.f32 1.442695, %v291_v56 }
 0x40d   : > { %791 = vpow2.f32 %v292_v57 }
 0x410   : > { %v417_v58 = vpop.xlane.xlu0 %416 }
 0x411   : > { %v418_v59 = vsub.f32 %v409_v43, %v417_v58 }
 0x413   : > { %v419_v60 = vmul.f32 1.442695, %v418_v59 }
 0x414   : > { %v304_v7 = vpop.permute.xlu0 %303 }
 0x415   : > { %793 = vpow2.f32 %v419_v60  ;;  %v309_v8 = vsel %vm186_vm3, %v304_v7, 0 }
 0x416   : > { %734 = vmatpush3.bf16.msra.mxu0 %v309_v8 }
 0x417   : > { %v792_v61 = vpop.eup %791  ;;  %745 = vmatprep.subr.bf16.mxu0 %v811_v0 }
 0x418   : > { %v544_v62 = vpop.xlane.xlu1 %543  ;;  %v294_v63 = vsel %vm170_vm2, %v792_v61, 0.0 }
 0x419   : > { %v545_v1 = vsub.f32 %v536_v48, %v544_v62  ;;  %295 = vadd.xlane.f32.xlu1 %v294_v63 }
 0x41b   : > { %v546_v2 = vmul.f32 1.442695, %v545_v1 }
 0x41c   : > { %v431_v10 = vpop.permute.xlu1 %430 }
 0x41d   : > { %795 = vpow2.f32 %v546_v2  ;;  %v436_v16 = vsel %vm186_vm3, %v431_v10, 0 }
 0x41f   : > { %v794_v3 = vpop.eup %793 }
 0x420   : > { %v421_v4 = vsel %vm170_vm2, %v794_v3, 0.0 }
 0x421   : > { %422 = vadd.xlane.f32.xlu1 %v421_v4 }
 0x427   : > { %v796_v5 = vpop.eup %795 }
 0x428   : > { %v548_v6 = vsel %vm170_vm2, %v796_v5, 0.0 }
 0x429   : > { %549 = vadd.xlane.f32.xlu1 %v548_v6 }
 0x43a   : > { %557 = vrot.lane.b32.xlu1 %v786_v9, %s815_s14 }
 0x4a6   : > { %v296_v11 = vpop.xlane.xlu1 %295 }
 0x4a7   : > { %797 = vrcp.f32 %v296_v11 }
 0x4ae   : > { %v423_v12 = vpop.xlane.xlu1 %422 }
 0x4af   : > { %799 = vrcp.f32 %v423_v12 }
 0x4b1   : > { %v798_v13 = vpop.eup %797 }
 0x4b2   : > { %v298_v14 = vmul.f32 %v798_v13, %v792_v61 }
 0x4b4   : > { %v299_v15 = vpack.c.bf16 %v298_v14, %v298_v14 }
 0x4b6   : > { %v550_v17 = vpop.xlane.xlu1 %549  ;;  %736 = vmatmul.mubr.msk.bf16.vlgmr.msra.gmra.mrb[4].mxu0 %vm170_vm2, %v299_v15 }
 0x4b7   : > { %801 = vrcp.f32 %v550_v17  ;;  %746 = vmatpush3.bf16.msra.mxu0 %v436_v16  ;;  %747 = vmatprep.mubr.msk.bf16.mxu0 %vm812_vm0, %v811_v0 }
 0x4b8   : > { %757 = vmatprep.subr.bf16.mxu0 %v811_v0 }
 0x4b9   : > { %v800_v18 = vpop.eup %799 }
 0x4ba   : > { %v425_v19 = vmul.f32 %v800_v18, %v794_v3  ;;  %v558_v20 = vpop.permute.xlu1 %557 }
 0x4bb   : > { %v563_v21 = vsel %vm186_vm3, %v558_v20, 0 }
 0x4bc   : > { %v426_v22 = vpack.c.bf16 %v425_v19, %v425_v19 }
 0x4be   : > { %748 = vmatmul.mubr.msk.bf16.vlgmr.msra.gmra.mrb[8].mxu0 %vm170_vm2, %v426_v22 }
 0x4bf   : > { %758 = vmatpush3.bf16.msra.mxu0 %v563_v21  ;;  %759 = vmatprep.mubr.msk.bf16.mxu0 %vm812_vm0, %v811_v0 }
 0x4c1   : > { %v802_v23 = vpop.eup %801 }
 0x4c2   : > { %v552_v24 = vmul.f32 %v802_v23, %v796_v5 }
 0x4c4   : > { %v553_v25 = vpack.c.bf16 %v552_v24, %v552_v24 }
 0x4c6   : > { %760 = vmatmul.mubr.msk.bf16.vlgmr.msra.gmra.mrb[12].mxu0 %vm170_vm2, %v553_v25 }
 0x589   : > { %v345_v26 = vpop.f32.mrb[4].mxu0 }
 0x58a   : > { %v696_v27 = vpack.c.bf16 %v345_v26, %v345_v26  ;;  %v737_v28 = vpop.f32.mrb[5].mxu0 }
 0x58b   : > { %v348_v29 = vpop.f32.mrb[6].mxu0 }
 0x58c   : > { %355 = vrot.lane.b32.xlu0 %v696_v27, %s819_s18  ;;  %v738_v30 = vpop.f32.mrb[7].mxu0 }
 0x591   : > { %v472_v31 = vpop.f32.mrb[8].mxu0 }
 0x592   : > { %v697_v32 = vpack.c.bf16 %v472_v31, %v472_v31  ;;  %v749_v33 = vpop.f32.mrb[9].mxu0 }
 0x593   : > { %v475_v34 = vpop.f32.mrb[10].mxu0 }
 0x594   : > { %482 = vrot.lane.b32.xlu1 %v697_v32, %s817_s16  ;;  %v750_v0 = vpop.f32.mrb[11].mxu0 }
 0x599   : > { %v599_v35 = vpop.f32.mrb[12].mxu0 }
 0x59a   : > { %v698_v36 = vpack.c.bf16 %v599_v35, %v599_v35  ;;  %v761_v37 = vpop.f32.mrb[13].mxu0 }
 0x59b   : > { %v602_v38 = vpop.f32.mrb[14].mxu0 }
 0x59c   : > { %609 = vrot.lane.b32.xlu0 %v698_v36, %s814_s13  ;;  %v762_v39 = vpop.f32.mrb[15].mxu0 }
 0x5fe   : > { %v356_v40 = vpop.permute.xlu0 %355 }
 0x5ff   : > { %359 = vst.msk [vmem:[%s891_s22] sm:$0xf] %vm358_vm5, %v356_v40 }
 0x606   : > { %v483_v41 = vpop.permute.xlu1 %482 }
 0x607   : > { %486 = vst.msk [vmem:[%s891_s22] sm:$0xf] %vm485_vm6, %v483_v41 }
 0x60e   : > { %v610_v42 = vpop.permute.xlu0 %609 }
 0x60f   : > { %613 = vst.msk [vmem:[%s891_s22] sm:$0xf] %vm612_vm7, %v610_v42 }
 0x610 PF: > { %s11_s6 = sadd.s32 1, %s809_s6  }
 0x611   : > { %p8_p4 = scmp.ge.s32.totalorder %s11_s6, 4  }
 0x613   :  { %10 = sbr.rel (!%p8_p4) target bundleno = 1 (0x1), region = 54 }

// kernel: action_recognition_forward.25
= control target key start
LH: loop header
LB: loop body
LE: loop exit
PB: predicated region body
PF: predicated region fallthrough
CT: control target
= control target key end

     0   :  { %vm16_vm0 = vcmask 261120   ;;  %s118_s0 = inlined_call_operand.vmem [shape: f32[16,32], index: 0, kind: input, shape index: {}]   ;;  %s119_s1 = inlined_call_operand.vmem [shape: f32[1,32], index: 1, kind: input, shape index: {}]   ;;  %s120_s2 = inlined_call_operand.vmem [shape: f32[1,32], index: 2, kind: input, shape index: {}]   ;;  %s121_s3 = inlined_call_operand.vmem [shape: f32[16,32], index: 3, kind: output, shape index: {}]  }
   0x1   :  { %v14_v0 = vld [vmem:[%s118_s0] sm:$0xff]  ;;  %v15_v1 = vld [vmem:[%s118_s0 + $0x8] sm:$0xff] }
   0x2   :  { %v17_v2 = vsel %vm16_vm0, %v14_v0, 0.0  ;;  %v20_v3 = vsel %vm16_vm0, %v15_v1, 0.0  ;;  %v68_v21 = vld [vmem:[%s119_s1] ss:$0 sm:$0xff] }
   0x3   :  { %18 = vadd.xlane.f32.xlu0 %v17_v2  ;;  %v69_v23 = vld [vmem:[%s120_s2] ss:$0 sm:$0xff] }
   0x7   :  { %21 = vadd.xlane.f32.xlu0 %v20_v3 }
  0x90   :  { %v19_v4 = vpop.xlane.xlu0 %18 }
  0x91   :  { %v24_v5 = vmul.f32 0.03125, %v19_v4 }
  0x93   :  { %v26_v6 = vsub.f32 %v14_v0, %v24_v5 }
  0x94   :  { %v22_v7 = vpop.xlane.xlu0 %21 }
  0x95   :  { %v25_v8 = vmul.f32 0.03125, %v22_v7  ;;  %v28_v9 = vmul.f32 %v26_v6, %v26_v6 }
  0x97   :  { %v27_v10 = vsub.f32 %v15_v1, %v25_v8  ;;  %v30_v11 = vsel %vm16_vm0, %v28_v9, 0.0 }
  0x98   :  { %31 = vadd.xlane.f32.xlu1 %v30_v11 }
  0x99   :  { %v29_v12 = vmul.f32 %v27_v10, %v27_v10 }
  0x9b   :  { %v33_v13 = vsel %vm16_vm0, %v29_v12, 0.0 }
  0x9c   :  { %34 = vadd.xlane.f32.xlu1 %v33_v13 }
 0x125   :  { %v32_v14 = vpop.xlane.xlu1 %31 }
 0x126   :  { %v36_v15 = vmul.f32 0.03125, %v32_v14 }
 0x128   :  { %v38_v16 = vadd.f32 1e-05, %v36_v15 }
 0x129   :  { %v35_v17 = vpop.xlane.xlu1 %34 }
 0x12a   :  { %70 = vrsqrt.f32 %v38_v16  ;;  %v37_v18 = vmul.f32 0.03125, %v35_v17 }
 0x12c   :  { %v39_v19 = vadd.f32 1e-05, %v37_v18 }
 0x12e   :  { %72 = vrsqrt.f32 %v39_v19 }
 0x134   :  { %v71_v20 = vpop.eup %70 }
 0x135   :  { %v42_v22 = vmul.f32 %v71_v20, %v26_v6 }
 0x137   :  { %v51_v24 = vmul.f32 %v68_v21, %v42_v22 }
 0x138   :  { %v73_v25 = vpop.eup %72 }
 0x139   :  { %v60_v26 = vadd.f32 %v69_v23, %v51_v24  ;;  %v43_v27 = vmul.f32 %v73_v25, %v27_v10 }
 0x13b   :  { %62 = vst.msk [vmem:[%s121_s3] sm:$0xff] %vm16_vm0, %v60_v26  ;;  %v52_v28 = vmul.f32 %v68_v21, %v43_v27 }
 0x13d   :  { %v61_v29 = vadd.f32 %v69_v23, %v52_v28 }
 0x13f   :  { %63 = vst.msk [vmem:[%s121_s3 + $0x8] sm:$0xff] %vm16_vm0, %v61_v29 }

// kernel: action_recognition_forward.18
= control target key start
LH: loop header
LB: loop body
LE: loop exit
PB: predicated region body
PF: predicated region fallthrough
CT: control target
= control target key end

     0   :  { %vm23_vm0 = vcmask 261120   ;;  %v203_v15 = vmov 0.0   ;;  %vm204_vm1 = vmmov 0   ;;  %vm163_vm2 = vcmask 519168   ;;  %s267_s0 = inlined_call_operand.vmem [shape: f32[16,32], index: 0, kind: input, shape index: {}]   ;;  %s268_s1 = inlined_call_operand.vmem [shape: bf16[32,64], index: 1, kind: input, shape index: {}]   ;;  %s269_s2 = inlined_call_operand.vmem [shape: f32[1,32], index: 2, kind: input, shape index: {}]   ;;  %s270_s3 = inlined_call_operand.vmem [shape: f32[1,32], index: 3, kind: input, shape index: {}]   ;;  %s271_s4 = inlined_call_operand.vmem [shape: f32[1,64], index: 4, kind: input, shape index: {}]   ;;  %s272_s5 = inlined_call_operand.vmem [shape: bf16[16,64], index: 5, kind: output, shape index: {}]  }
   0x1   :  { %v21_v0 = vld [vmem:[%s267_s0] sm:$0xff]  ;;  %v22_v1 = vld [vmem:[%s267_s0 + $0x8] sm:$0xff]  ;;  %183 = vmatprep.subr.bf16.mxu0 %v203_v15  ;;  %187 = vmatprep.mubr.msk.bf16.mxu0 %vm204_vm1, %v203_v15 }
   0x2   :  { %v24_v2 = vsel %vm23_vm0, %v21_v0, 0.0  ;;  %v27_v3 = vsel %vm23_vm0, %v22_v1, 0.0  ;;  %v193_v14 = vld [vmem:[%s268_s1] sm:$0xff]   ;;  %v194_v16 = vld [vmem:[%s268_s1 + $0x8] sm:$0xff]  }
   0x3   :  { %25 = vadd.xlane.f32.xlu0 %v24_v2  ;;  %184 = vmatpush3.bf16.msra.mxu0 %v193_v14  ;;  %v170_v25 = vld [vmem:[%s269_s2] ss:$0 sm:$0xff] }
   0x4   :  { %185 = vmatprep.subr.bf16.mxu0 %v203_v15  ;;  %v171_v29 = vld [vmem:[%s270_s3] ss:$0 sm:$0xff] }
   0x5   :  { %v172_v34 = vld [vmem:[%s271_s4] ss:$0 sm:$0xff] }
   0x7   :  { %28 = vadd.xlane.f32.xlu0 %v27_v3  ;;  %186 = vmatpush3.bf16.msra.mxu0 %v194_v16 }
  0x90   :  { %v26_v4 = vpop.xlane.xlu0 %25 }
  0x91   :  { %v31_v5 = vmul.f32 0.03125, %v26_v4 }
  0x93   :  { %v33_v6 = vsub.f32 %v21_v0, %v31_v5 }
  0x94   :  { %v29_v7 = vpop.xlane.xlu0 %28 }
  0x95   :  { %v32_v8 = vmul.f32 0.03125, %v29_v7  ;;  %v35_v9 = vmul.f32 %v33_v6, %v33_v6 }
  0x97   :  { %v34_v10 = vsub.f32 %v22_v1, %v32_v8  ;;  %v37_v11 = vsel %vm23_vm0, %v35_v9, 0.0 }
  0x98   :  { %38 = vadd.xlane.f32.xlu1 %v37_v11 }
  0x99   :  { %v36_v12 = vmul.f32 %v34_v10, %v34_v10 }
  0x9b   :  { %v40_v13 = vsel %vm23_vm0, %v36_v12, 0.0 }
  0x9c   :  { %41 = vadd.xlane.f32.xlu1 %v40_v13 }
 0x125   :  { %v39_v17 = vpop.xlane.xlu1 %38 }
 0x126   :  { %v43_v18 = vmul.f32 0.03125, %v39_v17 }
 0x128   :  { %v45_v19 = vadd.f32 1e-05, %v43_v18 }
 0x129   :  { %v42_v20 = vpop.xlane.xlu1 %41 }
 0x12a   :  { %195 = vrsqrt.f32 %v45_v19  ;;  %v44_v21 = vmul.f32 0.03125, %v42_v20 }
 0x12c   :  { %v46_v22 = vadd.f32 1e-05, %v44_v21 }
 0x12e   :  { %197 = vrsqrt.f32 %v46_v22 }
 0x134   :  { %v196_v23 = vpop.eup %195 }
 0x135   :  { %v49_v24 = vmul.f32 %v196_v23, %v33_v6 }
 0x137   :  { %v58_v28 = vmul.f32 %v170_v25, %v49_v24 }
 0x138   :  { %v198_v26 = vpop.eup %197 }
 0x139   :  { %v50_v27 = vmul.f32 %v198_v26, %v34_v10  ;;  %v67_v31 = vadd.f32 %v171_v29, %v58_v28 }
 0x13b   :  { %v59_v30 = vmul.f32 %v170_v25, %v50_v27 }
 0x13d   :  { %v68_v32 = vadd.f32 %v171_v29, %v59_v30 }
 0x13f   :  { %v69_v33 = vpack.c.bf16 %v68_v32, %v67_v31 }
 0x141   :  { %188 = vmatmul.mubr.msk.bf16.vlgmr.msra.gmra.mrb[0].mxu0 %vm23_vm0, %v69_v33 }
 0x214   :  { %v130_v35 = vpop.f32.mrb[0].mxu0 }
 0x215   :  { %v131_v36 = vadd.f32 %v172_v34, %v130_v35  ;;  %v189_v37 = vpop.f32.mrb[1].mxu0 }
 0x216   :  { %v133_v38 = vpop.f32.mrb[2].mxu0 }
 0x217   :  { %v137_v39 = vmul.f32 %v131_v36, %v131_v36  ;;  %v134_v40 = vadd.f32 %v172_v34, %v133_v38  ;;  %v190_v41 = vpop.f32.mrb[3].mxu0 }
 0x219   :  { %v139_v42 = vmul.f32 %v137_v39, %v131_v36  ;;  %v138_v43 = vmul.f32 %v134_v40, %v134_v40 }
 0x21b   :  { %v141_v44 = vmul.f32 0.044715, %v139_v42  ;;  %v140_v45 = vmul.f32 %v138_v43, %v134_v40 }
 0x21d   :  { %v143_v46 = vadd.f32 %v141_v44, %v131_v36  ;;  %v142_v47 = vmul.f32 0.044715, %v140_v45 }
 0x21f   :  { %v145_v48 = vmul.f32 0.7978846, %v143_v46  ;;  %v144_v49 = vadd.f32 %v142_v47, %v134_v40 }
 0x221   :  { %199 = vtanh.f32 %v145_v48  ;;  %v146_v50 = vmul.f32 0.7978846, %v144_v49 }
 0x223   :  { %201 = vtanh.f32 %v146_v50 }
 0x22b   :  { %v200_v51 = vpop.eup %199 }
 0x22c   :  { %v149_v52 = vadd.f32 1.0, %v200_v51 }
 0x22d   :  { %v202_v53 = vpop.eup %201 }
 0x22e   :  { %v151_v54 = vmul.f32 0.5, %v149_v52  ;;  %v150_v55 = vadd.f32 1.0, %v202_v53 }
 0x230   :  { %v153_v56 = vmul.f32 %v151_v54, %v131_v36  ;;  %v152_v57 = vmul.f32 0.5, %v150_v55 }
 0x232   :  { %v178_v58 = vpack.c.bf16 %v153_v56, %v153_v56  ;;  %v154_v59 = vmul.f32 %v152_v57, %v134_v40 }
 0x234   :  { %164 = vst.msk [vmem:[%s272_s5] sm:$0xf] %vm163_vm2, %v178_v58  ;;  %v179_v60 = vpack.c.bf16 %v154_v59, %v154_v59 }
 0x236   :  { %165 = vst.msk [vmem:[%s272_s5 + $0x4] sm:$0xf] %vm163_vm2, %v179_v60 }

</bundles_post_ra>
